<compile_context>
chip_gen: v7x
topology: tpu7x:2x2x1
jax: 0.10.0
libtpu: 0.0.40
codegen_flags: <defaults>
</compile_context>

<pallas_src>
import jax
import jax.numpy as jnp
from jax.experimental import pallas as pl
from jax.experimental.pallas import tpu as pltpu


def _make_encoder_block_kernel(k_sizes, eps):
    k1, k2, k3 = k_sizes

    def kernel(x_ref,
               dw1_ref, db1_ref, pw1_ref, pb1_ref,
               dw2_ref, db2_ref, pw2_ref, pb2_ref,
               dw3_ref, db3_ref, pw3_ref, pb3_ref,
               gamma_ref, beta_ref,
               o_ref):
        x = x_ref[...].astype(jnp.float32)        # [S, D] channels-last
        S, D = x.shape

        def sep_conv(dw_ref, db_ref, pw_ref, pb_ref, k):
            pad = k // 2
            zpad = jnp.zeros((pad, D), jnp.float32)
            xp = jnp.concatenate([zpad, x, zpad], axis=0)   # [S + 2*pad, D]
            dw = dw_ref[...]                                # [k, D], tap-major
            # depthwise conv: k shifted VPU multiply-adds (static unroll, k <= 7)
            acc = xp[0:S, :] * dw[0:1, :]
            for j in range(1, k):
                acc = acc + xp[j:j + S, :] * dw[j:j + 1, :]
            acc = acc + db_ref[...]                         # [1, D] bias broadcast
            # pointwise conv: MXU matmul, f32 accumulation
            z = jnp.dot(acc, pw_ref[...], preferred_element_type=jnp.float32)
            return z + pb_ref[...]

        o1 = sep_conv(dw1_ref, db1_ref, pw1_ref, pb1_ref, k1)
        o2 = sep_conv(dw2_ref, db2_ref, pw2_ref, pb2_ref, k2)
        o3 = sep_conv(dw3_ref, db3_ref, pw3_ref, pb3_ref, k3)
        out = jnp.concatenate([o1, o2, o3], axis=-1)        # [S, 3D], lane-dense

        # LayerNorm over the concatenated channel axis + ReLU (fused)
        mean = jnp.mean(out, axis=-1, keepdims=True)
        xc = out - mean
        var = jnp.mean(xc * xc, axis=-1, keepdims=True)
        inv = jax.lax.rsqrt(var + eps)
        y = xc * inv * gamma_ref[...] + beta_ref[...]
        o_ref[...] = jnp.maximum(y, 0.0).astype(o_ref.dtype)

    return kernel


def encoder_block_forward(x, params, *, k_sizes=(3, 5, 7), eps=1e-5):
    """x: [B, S, D] channels-last. Returns [B, S, 3*D]."""
    B, S, D = x.shape
    out_D = 3 * D
    kernel = _make_encoder_block_kernel(k_sizes, eps)

    names = ["dw1", "db1", "pw1", "pb1",
             "dw2", "db2", "pw2", "pb2",
             "dw3", "db3", "pw3", "pb3",
             "gamma", "beta"]
    weights = [params[n] for n in names]

    # x / out: one (squeezed-batch) block per grid step; weights: full-array blocks.
    in_specs = [pl.BlockSpec((None, S, D), lambda b: (b, 0, 0))]
    in_specs += [pl.BlockSpec(w.shape, lambda b: (0, 0)) for w in weights]
    out_spec = pl.BlockSpec((None, S, out_D), lambda b: (b, 0, 0))

    return pl.pallas_call(
        kernel,
        out_shape=jax.ShapeDtypeStruct((B, S, out_D), x.dtype),
        grid=(B,),
        in_specs=in_specs,
        out_specs=out_spec,
        compiler_params=pltpu.CompilerParams(
            # batch axis is independent -> shard across TensorCores on v7x
            dimension_semantics=("parallel",),
        ),
    )(x, *weights)


def init_encoder_block_params(key, d_model, k_sizes=(3, 5, 7)):
    """Deterministic parameters with the same shapes as the PyTorch module."""
    params = {}
    for i, k in enumerate(k_sizes, start=1):
        key, s1, s2, s3, s4 = jax.random.split(key, 5)
        b_dw = 1.0 / (k ** 0.5)          # depthwise fan_in = k (groups = in_ch)
        b_pw = 1.0 / (d_model ** 0.5)    # pointwise fan_in = d_model
        # depthwise weight stored tap-major [k, D]  (== torch [D, 1, k] transposed)
        params[f"dw{i}"] = jax.random.uniform(s1, (k, d_model), jnp.float32, -b_dw, b_dw)
        params[f"db{i}"] = jax.random.uniform(s2, (1, d_model), jnp.float32, -b_dw, b_dw)
        # pointwise weight stored [in, out]  (== torch [out, in, 1] transposed)
        params[f"pw{i}"] = jax.random.uniform(s3, (d_model, d_model), jnp.float32, -b_pw, b_pw)
        params[f"pb{i}"] = jax.random.uniform(s4, (1, d_model), jnp.float32, -b_pw, b_pw)
    params["gamma"] = jnp.ones((1, 3 * d_model), jnp.float32)   # LayerNorm defaults
    params["beta"] = jnp.zeros((1, 3 * d_model), jnp.float32)
    return params


def encoder_block_reference(x, params, *, k_sizes=(3, 5, 7), eps=1e-5):
    """Pure-JAX reference matching the PyTorch forward semantics."""
    B, S, D = x.shape

    def sep_conv(dw, db, pw, pb, k):
        pad = k // 2
        xp = jnp.pad(x, ((0, 0), (pad, pad), (0, 0)))
        y = jnp.zeros((B, S, D), jnp.float32)
        for j in range(k):
            y = y + xp[:, j:j + S, :] * dw[j][None, None, :]
        y = y + db[0][None, None, :]
        z = jnp.einsum("bsd,de->bse", y, pw,
                       precision=jax.lax.Precision.HIGHEST)
        return z + pb[0][None, None, :]

    outs = [sep_conv(params[f"dw{i}"], params[f"db{i}"],
                     params[f"pw{i}"], params[f"pb{i}"], k)
            for i, k in enumerate(k_sizes, start=1)]
    out = jnp.concatenate(outs, axis=-1)
    mean = out.mean(axis=-1, keepdims=True)
    var = ((out - mean) ** 2).mean(axis=-1, keepdims=True)
    y = (out - mean) / jnp.sqrt(var + eps)
    y = y * params["gamma"][0] + params["beta"][0]
    return jnp.maximum(y, 0.0)


if __name__ == "__main__":
    key = jax.random.PRNGKey(0)
    k_x, k_p = jax.random.split(key)

    # Small shapes consistent with the module; d_model = 128 keeps the channel axis
    # lane-dense (and 3*d_model = 384, a multiple of 128, for the output).
    batch, seq, d_model = 2, 16, 128
    k_sizes = (3, 5, 7)

    params = init_encoder_block_params(k_p, d_model, k_sizes)
    x = jax.random.normal(k_x, (batch, seq, d_model), dtype=jnp.float32)

    out = encoder_block_forward(x, params, k_sizes=k_sizes)
    out = jax.block_until_ready(out)

    ref = encoder_block_reference(x, params, k_sizes=k_sizes)
    assert out.shape == (batch, seq, 3 * d_model) and out.dtype == x.dtype
    max_err = float(jnp.max(jnp.abs(out - ref)))
    assert jnp.allclose(out, ref, atol=1e-3, rtol=1e-3), f"max abs err = {max_err}"

    print("KERNEL_OK")
</pallas_src>

<mosaic_0001>
module attributes {stable_mosaic.version = 11 : i64} {
  func.func @kernel(%arg0: i32, %arg1: memref<1x16x128xf32, #tpu.memory_space<vmem>>, %arg2: memref<3x128xf32, #tpu.memory_space<vmem>>, %arg3: memref<1x128xf32, #tpu.memory_space<vmem>>, %arg4: memref<128x128xf32, #tpu.memory_space<vmem>>, %arg5: memref<1x128xf32, #tpu.memory_space<vmem>>, %arg6: memref<5x128xf32, #tpu.memory_space<vmem>>, %arg7: memref<1x128xf32, #tpu.memory_space<vmem>>, %arg8: memref<128x128xf32, #tpu.memory_space<vmem>>, %arg9: memref<1x128xf32, #tpu.memory_space<vmem>>, %arg10: memref<7x128xf32, #tpu.memory_space<vmem>>, %arg11: memref<1x128xf32, #tpu.memory_space<vmem>>, %arg12: memref<128x128xf32, #tpu.memory_space<vmem>>, %arg13: memref<1x128xf32, #tpu.memory_space<vmem>>, %arg14: memref<1x384xf32, #tpu.memory_space<vmem>>, %arg15: memref<1x384xf32, #tpu.memory_space<vmem>>, %arg16: memref<1x16x384xf32, #tpu.memory_space<vmem>>) attributes {dimension_semantics = [#tpu.dimension_semantics<parallel>], iteration_bounds = array<i64: 2>, scalar_prefetch = 0 : i64, scratch_operands = 0 : i64, tpu.core_type = #tpu.core_type<tc>, window_params = [{transform_indices = @transform_0, window_bounds = array<i64: 1, 16, 128>}, {pipeline_mode = #tpu.pipeline_mode<synchronous>, transform_indices = @transform_1, window_bounds = array<i64: 3, 128>}, {pipeline_mode = #tpu.pipeline_mode<synchronous>, transform_indices = @transform_2, window_bounds = array<i64: 1, 128>}, {pipeline_mode = #tpu.pipeline_mode<synchronous>, transform_indices = @transform_3, window_bounds = array<i64: 128, 128>}, {pipeline_mode = #tpu.pipeline_mode<synchronous>, transform_indices = @transform_4, window_bounds = array<i64: 1, 128>}, {pipeline_mode = #tpu.pipeline_mode<synchronous>, transform_indices = @transform_5, window_bounds = array<i64: 5, 128>}, {pipeline_mode = #tpu.pipeline_mode<synchronous>, transform_indices = @transform_6, window_bounds = array<i64: 1, 128>}, {pipeline_mode = #tpu.pipeline_mode<synchronous>, transform_indices = @transform_7, window_bounds = array<i64: 128, 128>}, {pipeline_mode = #tpu.pipeline_mode<synchronous>, transform_indices = @transform_8, window_bounds = array<i64: 1, 128>}, {pipeline_mode = #tpu.pipeline_mode<synchronous>, transform_indices = @transform_9, window_bounds = array<i64: 7, 128>}, {pipeline_mode = #tpu.pipeline_mode<synchronous>, transform_indices = @transform_10, window_bounds = array<i64: 1, 128>}, {pipeline_mode = #tpu.pipeline_mode<synchronous>, transform_indices = @transform_11, window_bounds = array<i64: 128, 128>}, {pipeline_mode = #tpu.pipeline_mode<synchronous>, transform_indices = @transform_12, window_bounds = array<i64: 1, 128>}, {pipeline_mode = #tpu.pipeline_mode<synchronous>, transform_indices = @transform_13, window_bounds = array<i64: 1, 384>}, {pipeline_mode = #tpu.pipeline_mode<synchronous>, transform_indices = @transform_14, window_bounds = array<i64: 1, 384>}, {transform_indices = @transform_15, window_bounds = array<i64: 1, 16, 384>}]} {
    %c0 = arith.constant 0 : index
    %c0_0 = arith.constant 0 : index
    %c0_1 = arith.constant 0 : index
    %0 = vector.load %arg1[%c0, %c0_0, %c0_1] : memref<1x16x128xf32, #tpu.memory_space<vmem>>, vector<1x16x128xf32>
    %1 = vector.shape_cast %0 : vector<1x16x128xf32> to vector<16x128xf32>
    %cst = arith.constant 0.000000e+00 : f32
    %2 = vector.broadcast %cst : f32 to vector<1x128xf32>
    %3 = tpu.concatenate %2, %1, %2 in 0 : vector<1x128xf32>, vector<16x128xf32>, vector<1x128xf32> -> vector<18x128xf32>
    %c0_2 = arith.constant 0 : index
    %c0_3 = arith.constant 0 : index
    %4 = vector.load %arg2[%c0_2, %c0_3] : memref<3x128xf32, #tpu.memory_space<vmem>>, vector<3x128xf32>
    %5 = vector.extract_strided_slice %3 {offsets = [0, 0], sizes = [16, 128], strides = [1, 1]} : vector<18x128xf32> to vector<16x128xf32>
    %6 = vector.extract_strided_slice %4 {offsets = [0, 0], sizes = [1, 128], strides = [1, 1]} : vector<3x128xf32> to vector<1x128xf32>
    %7 = vector.broadcast %6 : vector<1x128xf32> to vector<16x128xf32>
    %8 = arith.mulf %5, %7 : vector<16x128xf32>
    %9 = vector.extract_strided_slice %3 {offsets = [1, 0], sizes = [16, 128], strides = [1, 1]} : vector<18x128xf32> to vector<16x128xf32>
    %10 = vector.extract_strided_slice %4 {offsets = [1, 0], sizes = [1, 128], strides = [1, 1]} : vector<3x128xf32> to vector<1x128xf32>
    %11 = vector.broadcast %10 : vector<1x128xf32> to vector<16x128xf32>
    %12 = arith.mulf %9, %11 : vector<16x128xf32>
    %13 = arith.addf %8, %12 : vector<16x128xf32>
    %14 = vector.extract_strided_slice %3 {offsets = [2, 0], sizes = [16, 128], strides = [1, 1]} : vector<18x128xf32> to vector<16x128xf32>
    %15 = vector.extract_strided_slice %4 {offsets = [2, 0], sizes = [1, 128], strides = [1, 1]} : vector<3x128xf32> to vector<1x128xf32>
    %16 = vector.broadcast %15 : vector<1x128xf32> to vector<16x128xf32>
    %17 = arith.mulf %14, %16 : vector<16x128xf32>
    %18 = arith.addf %13, %17 : vector<16x128xf32>
    %c0_4 = arith.constant 0 : index
    %c0_5 = arith.constant 0 : index
    %19 = vector.load %arg3[%c0_4, %c0_5] : memref<1x128xf32, #tpu.memory_space<vmem>>, vector<1x128xf32>
    %20 = vector.broadcast %19 : vector<1x128xf32> to vector<16x128xf32>
    %21 = arith.addf %18, %20 : vector<16x128xf32>
    %c0_6 = arith.constant 0 : index
    %c0_7 = arith.constant 0 : index
    %22 = vector.load %arg4[%c0_6, %c0_7] : memref<128x128xf32, #tpu.memory_space<vmem>>, vector<128x128xf32>
    %cst_8 = arith.constant dense<0.000000e+00> : vector<16x128xf32>
    %23 = tpu.matmul %21, %22, %cst_8 {dimension_numbers = #tpu.dot_dimension_numbers<[1], [0], [0], [1], [0, 0, 1, 1], [], []>} : vector<16x128xf32>, vector<128x128xf32>, vector<16x128xf32> -> vector<16x128xf32>
    %c0_9 = arith.constant 0 : index
    %c0_10 = arith.constant 0 : index
    %24 = vector.load %arg5[%c0_9, %c0_10] : memref<1x128xf32, #tpu.memory_space<vmem>>, vector<1x128xf32>
    %25 = vector.broadcast %24 : vector<1x128xf32> to vector<16x128xf32>
    %26 = arith.addf %23, %25 : vector<16x128xf32>
    %cst_11 = arith.constant 0.000000e+00 : f32
    %27 = vector.broadcast %cst_11 : f32 to vector<2x128xf32>
    %28 = tpu.concatenate %27, %1, %27 in 0 : vector<2x128xf32>, vector<16x128xf32>, vector<2x128xf32> -> vector<20x128xf32>
    %c0_12 = arith.constant 0 : index
    %c0_13 = arith.constant 0 : index
    %29 = vector.load %arg6[%c0_12, %c0_13] : memref<5x128xf32, #tpu.memory_space<vmem>>, vector<5x128xf32>
    %30 = vector.extract_strided_slice %28 {offsets = [0, 0], sizes = [16, 128], strides = [1, 1]} : vector<20x128xf32> to vector<16x128xf32>
    %31 = vector.extract_strided_slice %29 {offsets = [0, 0], sizes = [1, 128], strides = [1, 1]} : vector<5x128xf32> to vector<1x128xf32>
    %32 = vector.broadcast %31 : vector<1x128xf32> to vector<16x128xf32>
    %33 = arith.mulf %30, %32 : vector<16x128xf32>
    %34 = vector.extract_strided_slice %28 {offsets = [1, 0], sizes = [16, 128], strides = [1, 1]} : vector<20x128xf32> to vector<16x128xf32>
    %35 = vector.extract_strided_slice %29 {offsets = [1, 0], sizes = [1, 128], strides = [1, 1]} : vector<5x128xf32> to vector<1x128xf32>
    %36 = vector.broadcast %35 : vector<1x128xf32> to vector<16x128xf32>
    %37 = arith.mulf %34, %36 : vector<16x128xf32>
    %38 = arith.addf %33, %37 : vector<16x128xf32>
    %39 = vector.extract_strided_slice %28 {offsets = [2, 0], sizes = [16, 128], strides = [1, 1]} : vector<20x128xf32> to vector<16x128xf32>
    %40 = vector.extract_strided_slice %29 {offsets = [2, 0], sizes = [1, 128], strides = [1, 1]} : vector<5x128xf32> to vector<1x128xf32>
    %41 = vector.broadcast %40 : vector<1x128xf32> to vector<16x128xf32>
    %42 = arith.mulf %39, %41 : vector<16x128xf32>
    %43 = arith.addf %38, %42 : vector<16x128xf32>
    %44 = vector.extract_strided_slice %28 {offsets = [3, 0], sizes = [16, 128], strides = [1, 1]} : vector<20x128xf32> to vector<16x128xf32>
    %45 = vector.extract_strided_slice %29 {offsets = [3, 0], sizes = [1, 128], strides = [1, 1]} : vector<5x128xf32> to vector<1x128xf32>
    %46 = vector.broadcast %45 : vector<1x128xf32> to vector<16x128xf32>
    %47 = arith.mulf %44, %46 : vector<16x128xf32>
    %48 = arith.addf %43, %47 : vector<16x128xf32>
    %49 = vector.extract_strided_slice %28 {offsets = [4, 0], sizes = [16, 128], strides = [1, 1]} : vector<20x128xf32> to vector<16x128xf32>
    %50 = vector.extract_strided_slice %29 {offsets = [4, 0], sizes = [1, 128], strides = [1, 1]} : vector<5x128xf32> to vector<1x128xf32>
    %51 = vector.broadcast %50 : vector<1x128xf32> to vector<16x128xf32>
    %52 = arith.mulf %49, %51 : vector<16x128xf32>
    %53 = arith.addf %48, %52 : vector<16x128xf32>
    %c0_14 = arith.constant 0 : index
    %c0_15 = arith.constant 0 : index
    %54 = vector.load %arg7[%c0_14, %c0_15] : memref<1x128xf32, #tpu.memory_space<vmem>>, vector<1x128xf32>
    %55 = vector.broadcast %54 : vector<1x128xf32> to vector<16x128xf32>
    %56 = arith.addf %53, %55 : vector<16x128xf32>
    %c0_16 = arith.constant 0 : index
    %c0_17 = arith.constant 0 : index
    %57 = vector.load %arg8[%c0_16, %c0_17] : memref<128x128xf32, #tpu.memory_space<vmem>>, vector<128x128xf32>
    %cst_18 = arith.constant dense<0.000000e+00> : vector<16x128xf32>
    %58 = tpu.matmul %56, %57, %cst_18 {dimension_numbers = #tpu.dot_dimension_numbers<[1], [0], [0], [1], [0, 0, 1, 1], [], []>} : vector<16x128xf32>, vector<128x128xf32>, vector<16x128xf32> -> vector<16x128xf32>
    %c0_19 = arith.constant 0 : index
    %c0_20 = arith.constant 0 : index
    %59 = vector.load %arg9[%c0_19, %c0_20] : memref<1x128xf32, #tpu.memory_space<vmem>>, vector<1x128xf32>
    %60 = vector.broadcast %59 : vector<1x128xf32> to vector<16x128xf32>
    %61 = arith.addf %58, %60 : vector<16x128xf32>
    %cst_21 = arith.constant 0.000000e+00 : f32
    %62 = vector.broadcast %cst_21 : f32 to vector<3x128xf32>
    %63 = tpu.concatenate %62, %1, %62 in 0 : vector<3x128xf32>, vector<16x128xf32>, vector<3x128xf32> -> vector<22x128xf32>
    %c0_22 = arith.constant 0 : index
    %c0_23 = arith.constant 0 : index
    %64 = vector.load %arg10[%c0_22, %c0_23] : memref<7x128xf32, #tpu.memory_space<vmem>>, vector<7x128xf32>
    %65 = vector.extract_strided_slice %63 {offsets = [0, 0], sizes = [16, 128], strides = [1, 1]} : vector<22x128xf32> to vector<16x128xf32>
    %66 = vector.extract_strided_slice %64 {offsets = [0, 0], sizes = [1, 128], strides = [1, 1]} : vector<7x128xf32> to vector<1x128xf32>
    %67 = vector.broadcast %66 : vector<1x128xf32> to vector<16x128xf32>
    %68 = arith.mulf %65, %67 : vector<16x128xf32>
    %69 = vector.extract_strided_slice %63 {offsets = [1, 0], sizes = [16, 128], strides = [1, 1]} : vector<22x128xf32> to vector<16x128xf32>
    %70 = vector.extract_strided_slice %64 {offsets = [1, 0], sizes = [1, 128], strides = [1, 1]} : vector<7x128xf32> to vector<1x128xf32>
    %71 = vector.broadcast %70 : vector<1x128xf32> to vector<16x128xf32>
    %72 = arith.mulf %69, %71 : vector<16x128xf32>
    %73 = arith.addf %68, %72 : vector<16x128xf32>
    %74 = vector.extract_strided_slice %63 {offsets = [2, 0], sizes = [16, 128], strides = [1, 1]} : vector<22x128xf32> to vector<16x128xf32>
    %75 = vector.extract_strided_slice %64 {offsets = [2, 0], sizes = [1, 128], strides = [1, 1]} : vector<7x128xf32> to vector<1x128xf32>
    %76 = vector.broadcast %75 : vector<1x128xf32> to vector<16x128xf32>
    %77 = arith.mulf %74, %76 : vector<16x128xf32>
    %78 = arith.addf %73, %77 : vector<16x128xf32>
    %79 = vector.extract_strided_slice %63 {offsets = [3, 0], sizes = [16, 128], strides = [1, 1]} : vector<22x128xf32> to vector<16x128xf32>
    %80 = vector.extract_strided_slice %64 {offsets = [3, 0], sizes = [1, 128], strides = [1, 1]} : vector<7x128xf32> to vector<1x128xf32>
    %81 = vector.broadcast %80 : vector<1x128xf32> to vector<16x128xf32>
    %82 = arith.mulf %79, %81 : vector<16x128xf32>
    %83 = arith.addf %78, %82 : vector<16x128xf32>
    %84 = vector.extract_strided_slice %63 {offsets = [4, 0], sizes = [16, 128], strides = [1, 1]} : vector<22x128xf32> to vector<16x128xf32>
    %85 = vector.extract_strided_slice %64 {offsets = [4, 0], sizes = [1, 128], strides = [1, 1]} : vector<7x128xf32> to vector<1x128xf32>
    %86 = vector.broadcast %85 : vector<1x128xf32> to vector<16x128xf32>
    %87 = arith.mulf %84, %86 : vector<16x128xf32>
    %88 = arith.addf %83, %87 : vector<16x128xf32>
    %89 = vector.extract_strided_slice %63 {offsets = [5, 0], sizes = [16, 128], strides = [1, 1]} : vector<22x128xf32> to vector<16x128xf32>
    %90 = vector.extract_strided_slice %64 {offsets = [5, 0], sizes = [1, 128], strides = [1, 1]} : vector<7x128xf32> to vector<1x128xf32>
    %91 = vector.broadcast %90 : vector<1x128xf32> to vector<16x128xf32>
    %92 = arith.mulf %89, %91 : vector<16x128xf32>
    %93 = arith.addf %88, %92 : vector<16x128xf32>
    %94 = vector.extract_strided_slice %63 {offsets = [6, 0], sizes = [16, 128], strides = [1, 1]} : vector<22x128xf32> to vector<16x128xf32>
    %95 = vector.extract_strided_slice %64 {offsets = [6, 0], sizes = [1, 128], strides = [1, 1]} : vector<7x128xf32> to vector<1x128xf32>
    %96 = vector.broadcast %95 : vector<1x128xf32> to vector<16x128xf32>
    %97 = arith.mulf %94, %96 : vector<16x128xf32>
    %98 = arith.addf %93, %97 : vector<16x128xf32>
    %c0_24 = arith.constant 0 : index
    %c0_25 = arith.constant 0 : index
    %99 = vector.load %arg11[%c0_24, %c0_25] : memref<1x128xf32, #tpu.memory_space<vmem>>, vector<1x128xf32>
    %100 = vector.broadcast %99 : vector<1x128xf32> to vector<16x128xf32>
    %101 = arith.addf %98, %100 : vector<16x128xf32>
    %c0_26 = arith.constant 0 : index
    %c0_27 = arith.constant 0 : index
    %102 = vector.load %arg12[%c0_26, %c0_27] : memref<128x128xf32, #tpu.memory_space<vmem>>, vector<128x128xf32>
    %cst_28 = arith.constant dense<0.000000e+00> : vector<16x128xf32>
    %103 = tpu.matmul %101, %102, %cst_28 {dimension_numbers = #tpu.dot_dimension_numbers<[1], [0], [0], [1], [0, 0, 1, 1], [], []>} : vector<16x128xf32>, vector<128x128xf32>, vector<16x128xf32> -> vector<16x128xf32>
    %c0_29 = arith.constant 0 : index
    %c0_30 = arith.constant 0 : index
    %104 = vector.load %arg13[%c0_29, %c0_30] : memref<1x128xf32, #tpu.memory_space<vmem>>, vector<1x128xf32>
    %105 = vector.broadcast %104 : vector<1x128xf32> to vector<16x128xf32>
    %106 = arith.addf %103, %105 : vector<16x128xf32>
    %107 = tpu.concatenate %26, %61, %106 in 1 : vector<16x128xf32>, vector<16x128xf32>, vector<16x128xf32> -> vector<16x384xf32>
    %cst_31 = arith.constant dense<0.000000e+00> : vector<16xf32>
    %108 = vector.multi_reduction <add>, %107, %cst_31 [1] : vector<16x384xf32> to vector<16xf32>
    %109 = vector.shape_cast %108 : vector<16xf32> to vector<16x1xf32>
    %cst_32 = arith.constant 3.840000e+02 : f32
    %110 = vector.broadcast %cst_32 : f32 to vector<16x1xf32>
    %111 = arith.divf %109, %110 : vector<16x1xf32>
    %112 = vector.broadcast %111 : vector<16x1xf32> to vector<16x384xf32>
    %113 = arith.subf %107, %112 : vector<16x384xf32>
    %114 = arith.mulf %113, %113 : vector<16x384xf32>
    %cst_33 = arith.constant dense<0.000000e+00> : vector<16xf32>
    %115 = vector.multi_reduction <add>, %114, %cst_33 [1] : vector<16x384xf32> to vector<16xf32>
    %116 = vector.shape_cast %115 : vector<16xf32> to vector<16x1xf32>
    %cst_34 = arith.constant 3.840000e+02 : f32
    %117 = vector.broadcast %cst_34 : f32 to vector<16x1xf32>
    %118 = arith.divf %116, %117 : vector<16x1xf32>
    %cst_35 = arith.constant 9.99999974E-6 : f32
    %119 = vector.broadcast %cst_35 : f32 to vector<16x1xf32>
    %120 = arith.addf %118, %119 : vector<16x1xf32>
    %121 = math.rsqrt %120 : vector<16x1xf32>
    %122 = vector.broadcast %121 : vector<16x1xf32> to vector<16x384xf32>
    %123 = arith.mulf %113, %122 : vector<16x384xf32>
    %c0_36 = arith.constant 0 : index
    %c0_37 = arith.constant 0 : index
    %124 = vector.load %arg14[%c0_36, %c0_37] : memref<1x384xf32, #tpu.memory_space<vmem>>, vector<1x384xf32>
    %125 = vector.broadcast %124 : vector<1x384xf32> to vector<16x384xf32>
    %126 = arith.mulf %123, %125 : vector<16x384xf32>
    %c0_38 = arith.constant 0 : index
    %c0_39 = arith.constant 0 : index
    %127 = vector.load %arg15[%c0_38, %c0_39] : memref<1x384xf32, #tpu.memory_space<vmem>>, vector<1x384xf32>
    %128 = vector.broadcast %127 : vector<1x384xf32> to vector<16x384xf32>
    %129 = arith.addf %126, %128 : vector<16x384xf32>
    %cst_40 = arith.constant 0.000000e+00 : f32
    %130 = vector.broadcast %cst_40 : f32 to vector<16x384xf32>
    %131 = arith.maximumf %129, %130 : vector<16x384xf32>
    %c0_41 = arith.constant 0 : index
    %c0_42 = arith.constant 0 : index
    %c0_43 = arith.constant 0 : index
    %132 = vector.load %arg16[%c0_41, %c0_42, %c0_43] : memref<1x16x384xf32, #tpu.memory_space<vmem>>, vector<1x16x384xf32>
    %133 = vector.shape_cast %132 : vector<1x16x384xf32> to vector<16x384xf32>
    %134 = vector.shape_cast %131 : vector<16x384xf32> to vector<1x16x384xf32>
    tpu.vector_store %arg16[%c0_41, %c0_42, %c0_43], %134 {strides = array<i32>} : memref<1x16x384xf32, #tpu.memory_space<vmem>>, vector<1x16x384xf32>,
    return
  }
  func.func @transform_0(%arg0: i32) -> (i32, i32, i32) {
    %c0_i32 = arith.constant 0 : i32
    %c0_i32_0 = arith.constant 0 : i32
    %c0_i32_1 = arith.constant 0 : i32
    return %arg0, %c0_i32, %c0_i32_0 : i32, i32, i32
  }
  func.func @transform_1(%arg0: i32) -> (i32, i32) {
    %c0_i32 = arith.constant 0 : i32
    %c0_i32_0 = arith.constant 0 : i32
    %c0_i32_1 = arith.constant 0 : i32
    return %c0_i32, %c0_i32_0 : i32, i32
  }
  func.func @transform_2(%arg0: i32) -> (i32, i32) {
    %c0_i32 = arith.constant 0 : i32
    %c0_i32_0 = arith.constant 0 : i32
    %c0_i32_1 = arith.constant 0 : i32
    return %c0_i32, %c0_i32_0 : i32, i32
  }
  func.func @transform_3(%arg0: i32) -> (i32, i32) {
    %c0_i32 = arith.constant 0 : i32
    %c0_i32_0 = arith.constant 0 : i32
    %c0_i32_1 = arith.constant 0 : i32
    return %c0_i32, %c0_i32_0 : i32, i32
  }
  func.func @transform_4(%arg0: i32) -> (i32, i32) {
    %c0_i32 = arith.constant 0 : i32
    %c0_i32_0 = arith.constant 0 : i32
    %c0_i32_1 = arith.constant 0 : i32
    return %c0_i32, %c0_i32_0 : i32, i32
  }
  func.func @transform_5(%arg0: i32) -> (i32, i32) {
    %c0_i32 = arith.constant 0 : i32
    %c0_i32_0 = arith.constant 0 : i32
    %c0_i32_1 = arith.constant 0 : i32
    return %c0_i32, %c0_i32_0 : i32, i32
  }
  func.func @transform_6(%arg0: i32) -> (i32, i32) {
    %c0_i32 = arith.constant 0 : i32
    %c0_i32_0 = arith.constant 0 : i32
    %c0_i32_1 = arith.constant 0 : i32
    return %c0_i32, %c0_i32_0 : i32, i32
  }
  func.func @transform_7(%arg0: i32) -> (i32, i32) {
    %c0_i32 = arith.constant 0 : i32
    %c0_i32_0 = arith.constant 0 : i32
    %c0_i32_1 = arith.constant 0 : i32
    return %c0_i32, %c0_i32_0 : i32, i32
  }
  func.func @transform_8(%arg0: i32) -> (i32, i32) {
    %c0_i32 = arith.constant 0 : i32
    %c0_i32_0 = arith.constant 0 : i32
    %c0_i32_1 = arith.constant 0 : i32
    return %c0_i32, %c0_i32_0 : i32, i32
  }
  func.func @transform_9(%arg0: i32) -> (i32, i32) {
    %c0_i32 = arith.constant 0 : i32
    %c0_i32_0 = arith.constant 0 : i32
    %c0_i32_1 = arith.constant 0 : i32
    return %c0_i32, %c0_i32_0 : i32, i32
  }
  func.func @transform_10(%arg0: i32) -> (i32, i32) {
    %c0_i32 = arith.constant 0 : i32
    %c0_i32_0 = arith.constant 0 : i32
    %c0_i32_1 = arith.constant 0 : i32
    return %c0_i32, %c0_i32_0 : i32, i32
  }
  func.func @transform_11(%arg0: i32) -> (i32, i32) {
    %c0_i32 = arith.constant 0 : i32
    %c0_i32_0 = arith.constant 0 : i32
    %c0_i32_1 = arith.constant 0 : i32
    return %c0_i32, %c0_i32_0 : i32, i32
  }
  func.func @transform_12(%arg0: i32) -> (i32, i32) {
    %c0_i32 = arith.constant 0 : i32
    %c0_i32_0 = arith.constant 0 : i32
    %c0_i32_1 = arith.constant 0 : i32
    return %c0_i32, %c0_i32_0 : i32, i32
  }
  func.func @transform_13(%arg0: i32) -> (i32, i32) {
    %c0_i32 = arith.constant 0 : i32
    %c0_i32_0 = arith.constant 0 : i32
    %c0_i32_1 = arith.constant 0 : i32
    return %c0_i32, %c0_i32_0 : i32, i32
  }
  func.func @transform_14(%arg0: i32) -> (i32, i32) {
    %c0_i32 = arith.constant 0 : i32
    %c0_i32_0 = arith.constant 0 : i32
    %c0_i32_1 = arith.constant 0 : i32
    return %c0_i32, %c0_i32_0 : i32, i32
  }
  func.func @transform_15(%arg0: i32) -> (i32, i32, i32) {
    %c0_i32 = arith.constant 0 : i32
    %c0_i32_0 = arith.constant 0 : i32
    %c0_i32_1 = arith.constant 0 : i32
    return %arg0, %c0_i32, %c0_i32_0 : i32, i32, i32
  }
}

</mosaic_0001>

<bundles_post_ra>
// kernel: tpu_custom_call.1
= control target key start
LH: loop header
LB: loop body
LE: loop exit
PB: predicated region body
PF: predicated region fallthrough
CT: control target
= control target key end

     0   :  { %s2808_s0 = inlined_call_operand.hbm [shape: f32[2,16,128], index: 0, kind: input, shape index: {}]   ;;  %s2809_s1 = inlined_call_operand.hbm [shape: f32[3,128], index: 1, kind: input, shape index: {}]   ;;  %s2810_s2 = inlined_call_operand.hbm [shape: f32[1,128], index: 2, kind: input, shape index: {}]   ;;  %s2811_s3 = inlined_call_operand.hbm [shape: f32[128,128], index: 3, kind: input, shape index: {}]   ;;  %s2812_s4 = inlined_call_operand.hbm [shape: f32[1,128], index: 4, kind: input, shape index: {}]   ;;  %s2813_s5 = inlined_call_operand.vmem [shape: f32[5,128], index: 5, kind: input, shape index: {}]   ;;  %s2814_s6 = inlined_call_operand.hbm [shape: f32[1,128], index: 6, kind: input, shape index: {}]   ;;  %s2815_s7 = inlined_call_operand.hbm [shape: f32[128,128], index: 7, kind: input, shape index: {}]   ;;  %s2816_s8 = inlined_call_operand.vmem [shape: f32[1,128], index: 8, kind: input, shape index: {}]   ;;  %s2817_s9 = inlined_call_operand.vmem [shape: f32[7,128], index: 9, kind: input, shape index: {}]   ;;  %s2818_s10 = inlined_call_operand.vmem [shape: f32[1,128], index: 10, kind: input, shape index: {}]   ;;  %s2819_s11 = inlined_call_operand.hbm [shape: f32[128,128], index: 11, kind: input, shape index: {}]   ;;  %s2820_s12 = inlined_call_operand.vmem [shape: f32[1,128], index: 12, kind: input, shape index: {}]   ;;  %s2821_s13 = inlined_call_operand.vmem [shape: f32[1,384], index: 13, kind: input, shape index: {}]   ;;  %s2822_s14 = inlined_call_operand.vmem [shape: f32[1,384], index: 14, kind: input, shape index: {}]   ;;  %s2823_s15 = inlined_call_operand.hbm [shape: f32[2,16,384], index: 15, kind: output, shape index: {}]  }
   0x1   :  { %2832 = sst [smem:[#allocation23_spill]] %s2809_s1 }
   0x2   :  { %2833 = sst [smem:[#allocation24_spill]] %s2810_s2 }
   0x3   :  { %2834 = sst [smem:[#allocation25_spill]] %s2811_s3 }
   0x4   :  { %2835 = sst [smem:[#allocation26_spill]] %s2812_s4 }
   0x5   :  { %2836 = sst [smem:[#allocation27_spill]] %s2816_s8 }
   0x6   :  { %2837 = sst [smem:[#allocation28_spill]] %s2820_s12 }
   0x7   :  { %2838 = sst [smem:[#allocation29_spill]] %s2821_s13 }
   0x8   :  { %2839 = sst [smem:[#allocation30_spill]] %s2822_s14 }
   0x9   :  { %2840 = sst [smem:[#allocation31_spill]] %s2823_s15 }
   0xa   :  { %20 = vsyncpa [#allocation3], 0 }
   0xb   :  { %22 = vsyncpa [#allocation3 + $0x1], 0 }
   0xc   :  { %23 = vsyncpa [#allocation6], 0 }
   0xd   :  { %24 = vsyncpa [#allocation9], 0 }
   0xe   :  { %25 = vsyncpa [#allocation12], 0 }
   0xf   :  { %26 = vsyncpa [#allocation15], 0 }
  0x10   :  { %27 = vsyncpa [#allocation4], 0 }
  0x11   :  { %29 = vsyncpa [#allocation4 + $0x1], 0  ;;  %s2284_s18 = smov 0   ;;  %s2286_s19 = smov 0  }
  0x12   :  { %s2288_s20 = smov 0   ;;  %s2290_s21 = smov 0  }
  0x13 LB: > { %s2191_s22 = smov [#allocation5]   ;;  %s2305_s24 = sadd.s32 4294967295, %s2189_s21   ;;  %s2189_s21 = sphi %s2290_s21, %s2875_s21   ;;  %s2185_s20 = sphi %s2288_s20, %s2874_s20   ;;  %s2181_s19 = sphi %s2286_s19, %s2873_s19   ;;  %s2177_s18 = sphi %s2284_s18, %s2872_s18  }
  0x14   : > { %s399_s23 = sshll.u32 %s2191_s22, 4  ;;  %p1468_p0 = scmp.ge.s32.totalorder %s2189_s21, 1  ;;  %s400_s23 = int_to_ptr.vmem [resolvable:$true] %s399_s23 }
  0x15   : > { %p2825_p1 = scmp.eq.s32.totalorder %s2305_s24, 0  ;;  %p386_p2 = scmp.lt.s32.totalorder %s2189_s21, 3 }
  0x16   : > { %s2192_s26 = smov [#allocation8]   ;;  %s2193_s29 = smov [#allocation11]  }
  0x17   : > { %p2310_p3 = pnand %p1468_p0, %p386_p2  ;;  %s420_s27 = sshll.u32 %s2192_s26, 4  ;;  %s2317_s27 = int_to_ptr.vmem [resolvable:$true] %s420_s27 }
  0x18   : > { %s448_s30 = sshll.u32 %s2193_s29, 4  ;;  %s2843_s1 = sld [smem:[#allocation23_spill]]  ;;  %s2325_s30 = int_to_ptr.vmem [resolvable:$true] %s448_s30 }
  0x19   : > { %s2841_s25 = scalar_select %p2310_p3, 1, 0 }
  0x1a   : > { %p1788_p5 = pneg %p2310_p3 }
  0x1c   : > { %p2321_p6 = pnand %p1788_p5, %p2825_p1 }
  0x1e   : > { %s1881_s22 = scalar_lea.hbm %s2843_s1, 64  ;;  %p2335_p8 = pneg %p2321_p6 }
  0x1f   : > { %p1882_p7 = scmp.ne.s32.totalorder %s2843_s1, %s1881_s22  ;;  %p1888_p11 = scmp.lt.u32.totalorder %s1881_s22, %s2843_s1 }
  0x21   : > { %p1884_p9 = pnand %p2335_p8, %p1882_p7 }
  0x23   : > { %p1885_p10 = pneg %p1884_p9 }
  0x25   : > { %p1890_p12 = pnand %p1888_p11, %p1885_p10 }
  0x27   : > { %1893 = shalt.err (!%p1890_p12)
}
  0x28   : > { %s1894_s16 = scalar_lea.vmem %s400_s23, 64  ;;  %p1902_p5 = scmp.lt.s32.totalorder %s400_s23, %s400_s23 }
  0x29   : > { %p1895_p13 = scmp.ne.s32.totalorder %s400_s23, %s1894_s16  ;;  %p1903_p4 = scmp.lt.s32.totalorder %s1894_s16, %s1894_s16 }
  0x2b   : > { %p1897_p0 = pnand %p1895_p13, %p2335_p8  ;;  %p1904_p1 = por %p1903_p4, %p1902_p5 }
  0x2d   : > { %p1898_p2 = pneg %p1897_p0 }
  0x2f   : > { %p1905_p3 = pnand %p1904_p1, %p1898_p2 }
  0x31   : > { %1908 = shalt.err (!%p1905_p3)
}
  0x32   : > { %1791 = dma.hbm_to_vmem [thread:$0]  (!%p2321_p6), %s2843_s1, 64, %s400_s23, [#allocation6]  }
  0x33   : > { %s2845_s3 = sld [smem:[#allocation25_spill]] }
  0x39   : > { %s1909_s22 = scalar_lea.hbm %s2845_s3, 2048 }
  0x3a   : > { %p1910_p7 = scmp.ne.s32.totalorder %s2845_s3, %s1909_s22  ;;  %p1916_p1 = scmp.lt.u32.totalorder %s1909_s22, %s2845_s3 }
  0x3c   : > { %p1912_p9 = pnand %p1910_p7, %p2335_p8 }
  0x3e   : > { %p1913_p4 = pneg %p1912_p9 }
  0x40   : > { %p1918_p3 = pnand %p1916_p1, %p1913_p4 }
  0x42   : > { %1921 = shalt.err (!%p1918_p3)
}
  0x43   : > { %s1922_s23 = scalar_lea.vmem %s2317_s27, 2048  ;;  %p1930_p13 = scmp.lt.s32.totalorder %s2317_s27, %s2317_s27 }
  0x44   : > { %p1923_p10 = scmp.ne.s32.totalorder %s2317_s27, %s1922_s23  ;;  %p1931_p0 = scmp.lt.s32.totalorder %s1922_s23, %s1922_s23 }
  0x46   : > { %p1925_p11 = pnand %p1923_p10, %p2335_p8  ;;  %p1932_p2 = por %p1931_p0, %p1930_p13 }
  0x48   : > { %p1926_p12 = pneg %p1925_p11 }
  0x4a   : > { %p1933_p5 = pnand %p1932_p2, %p1926_p12 }
  0x4c   : > { %1936 = shalt.err (!%p1933_p5)
}
  0x4d   : > { %s2827_s12 = smov 128   ;;  %s2829_s8 = smov 8  }
  0x4e   : > { %1797 = dma.hbm_to_vmem [thread:$0]  (!%p2321_p6), %s2845_s3, 2048, %s2317_s27, [#allocation9], %s2827_s12, %s2827_s12, %s2829_s8  }
  0x4f   : > { %s1937_s22 = scalar_lea.hbm %s2814_s6, 16 }
  0x50   : > { %p1938_p7 = scmp.ne.s32.totalorder %s2814_s6, %s1937_s22  ;;  %p1944_p1 = scmp.lt.u32.totalorder %s1937_s22, %s2814_s6 }
  0x52   : > { %p1940_p9 = pnand %p1938_p7, %p2335_p8 }
  0x54   : > { %p1941_p4 = pneg %p1940_p9 }
  0x56   : > { %p1946_p3 = pnand %p1944_p1, %p1941_p4 }
  0x58   : > { %1949 = shalt.err (!%p1946_p3)
}
  0x59   : > { %s1950_s27 = scalar_lea.vmem %s2325_s30, 16  ;;  %s1957_s14 = scalar_lea.vmem %s2325_s30, 32 }
  0x5a   : > { %p1951_p10 = scmp.ne.s32.totalorder %s2325_s30, %s1950_s27  ;;  %p1958_p13 = scmp.lt.s32.totalorder %s2325_s30, %s2325_s30 }
  0x5b   : > { %p1959_p0 = scmp.lt.s32.totalorder %s1957_s14, %s1950_s27 }
  0x5c   : > { %p1953_p11 = pnand %p1951_p10, %p2335_p8 }
  0x5d   : > { %p1960_p2 = por %p1959_p0, %p1958_p13 }
  0x5e   : > { %p1954_p12 = pneg %p1953_p11 }
  0x60   : > { %p1961_p5 = pnand %p1960_p2, %p1954_p12 }
  0x62   : > { %1964 = shalt.err (!%p1961_p5)
}
  0x63   : > { %1803 = dma.hbm_to_vmem [thread:$0]  (!%p2321_p6), %s2814_s6, 16, %s2325_s30, [#allocation12]  }
  0x64   : > { %s2196_s13 = smov [#allocation7]   ;;  %s2197_s22 = smov [#allocation10]  }
  0x65   : > { %s410_s17 = sshll.u32 %s2196_s13, 4  ;;  %s434_s29 = sshll.u32 %s2197_s22, 4  ;;  %s411_s17 = int_to_ptr.vmem [resolvable:$true] %s410_s17  ;;  %s435_s29 = int_to_ptr.vmem [resolvable:$true] %s434_s29 }
  0x66   : > { %s2846_s2 = sld [smem:[#allocation24_spill]] }
  0x6c   : > { %s1965_s27 = scalar_lea.hbm %s2846_s2, 16 }
  0x6d   : > { %p1966_p7 = scmp.ne.s32.totalorder %s2846_s2, %s1965_s27  ;;  %p1972_p1 = scmp.lt.u32.totalorder %s1965_s27, %s2846_s2 }
  0x6f   : > { %p1968_p9 = pnand %p1966_p7, %p2335_p8 }
  0x71   : > { %p1969_p4 = pneg %p1968_p9 }
  0x73   : > { %p1974_p3 = pnand %p1972_p1, %p1969_p4 }
  0x75   : > { %1977 = shalt.err (!%p1974_p3)
}
  0x76   : > { %s1978_s30 = scalar_lea.vmem %s411_s17, 16  ;;  %s1985_s15 = scalar_lea.vmem %s411_s17, 32 }
  0x77   : > { %p1979_p10 = scmp.ne.s32.totalorder %s411_s17, %s1978_s30  ;;  %p1986_p13 = scmp.lt.s32.totalorder %s411_s17, %s411_s17 }
  0x78   : > { %p1987_p0 = scmp.lt.s32.totalorder %s1985_s15, %s1978_s30 }
  0x79   : > { %p1981_p11 = pnand %p1979_p10, %p2335_p8 }
  0x7a   : > { %p1988_p2 = por %p1987_p0, %p1986_p13 }
  0x7b   : > { %p1982_p12 = pneg %p1981_p11 }
  0x7d   : > { %p1989_p5 = pnand %p1988_p2, %p1982_p12 }
  0x7f   : > { %1992 = shalt.err (!%p1989_p5)
}
  0x80   : > { %1794 = dma.hbm_to_vmem [thread:$0]  (!%p2321_p6), %s2846_s2, 16, %s411_s17, [#allocation6]  }
  0x81   : > { %s2847_s4 = sld [smem:[#allocation26_spill]] }
  0x87   : > { %s1993_s16 = scalar_lea.hbm %s2847_s4, 16 }
  0x88   : > { %p1994_p7 = scmp.ne.s32.totalorder %s2847_s4, %s1993_s16  ;;  %p2000_p1 = scmp.lt.u32.totalorder %s1993_s16, %s2847_s4 }
  0x8a   : > { %p1996_p9 = pnand %p1994_p7, %p2335_p8 }
  0x8c   : > { %p1997_p4 = pneg %p1996_p9 }
  0x8e   : > { %p2002_p3 = pnand %p2000_p1, %p1997_p4 }
  0x90   : > { %2005 = shalt.err (!%p2002_p3)
}
  0x91   : > { %s2006_s30 = scalar_lea.vmem %s435_s29, 16  ;;  %s2013_s17 = scalar_lea.vmem %s435_s29, 32 }
  0x92   : > { %p2007_p10 = scmp.ne.s32.totalorder %s435_s29, %s2006_s30  ;;  %p2014_p13 = scmp.lt.s32.totalorder %s435_s29, %s435_s29 }
  0x93   : > { %p2015_p0 = scmp.lt.s32.totalorder %s2013_s17, %s2006_s30 }
  0x94   : > { %p2009_p11 = pnand %p2007_p10, %p2335_p8 }
  0x95   : > { %p2016_p2 = por %p2015_p0, %p2014_p13 }
  0x96   : > { %p2010_p12 = pneg %p2009_p11 }
  0x98   : > { %p2017_p5 = pnand %p2016_p2, %p2010_p12 }
  0x9a   : > { %2020 = shalt.err (!%p2017_p5)
}
  0x9b   : > { %1800 = dma.hbm_to_vmem [thread:$0]  (!%p2321_p6), %s2847_s4, 16, %s435_s29, [#allocation9]  }
  0x9c   : > { %s2198_s13 = smov [#allocation13]   ;;  %s2199_s22 = smov [#allocation14]  }
  0x9d   : > { %s458_s8 = sshll.u32 %s2198_s13, 4  ;;  %s480_s16 = sshll.u32 %s2199_s22, 4  ;;  %s459_s8 = int_to_ptr.vmem [resolvable:$true] %s458_s8  ;;  %s481_s16 = int_to_ptr.vmem [resolvable:$true] %s480_s16 }
  0x9e   : > { %s2021_s14 = scalar_lea.hbm %s2815_s7, 2048 }
  0x9f   : > { %p2022_p7 = scmp.ne.s32.totalorder %s2815_s7, %s2021_s14  ;;  %p2028_p1 = scmp.lt.u32.totalorder %s2021_s14, %s2815_s7 }
  0xa1   : > { %p2024_p9 = pnand %p2022_p7, %p2335_p8 }
  0xa3   : > { %p2025_p4 = pneg %p2024_p9 }
  0xa5   : > { %p2030_p3 = pnand %p2028_p1, %p2025_p4 }
  0xa7   : > { %2033 = shalt.err (!%p2030_p3)
}
  0xa8   : > { %s2034_s29 = scalar_lea.vmem %s459_s8, 2048  ;;  %p2042_p13 = scmp.lt.s32.totalorder %s459_s8, %s459_s8 }
  0xa9   : > { %p2035_p10 = scmp.ne.s32.totalorder %s459_s8, %s2034_s29  ;;  %p2043_p0 = scmp.lt.s32.totalorder %s2034_s29, %s2034_s29 }
  0xab   : > { %p2037_p11 = pnand %p2035_p10, %p2335_p8  ;;  %p2044_p2 = por %p2043_p0, %p2042_p13 }
  0xad   : > { %p2038_p12 = pneg %p2037_p11 }
  0xaf   : > { %p2045_p5 = pnand %p2044_p2, %p2038_p12 }
  0xb1   : > { %2048 = shalt.err (!%p2045_p5)
}
  0xb2   : > { %s2848_s12 = smov 8   ;;  %s2849_s13 = smov 128  }
  0xb3   : > { %1806 = dma.hbm_to_vmem [thread:$0]  (!%p2321_p6), %s2815_s7, 2048, %s459_s8, [#allocation12], %s2849_s13, %s2849_s13, %s2848_s12  }
  0xb4   : > { %s2049_s1 = scalar_lea.hbm %s2819_s11, 2048 }
  0xb5   : > { %p2050_p7 = scmp.ne.s32.totalorder %s2819_s11, %s2049_s1  ;;  %p2056_p1 = scmp.lt.u32.totalorder %s2049_s1, %s2819_s11 }
  0xb7   : > { %p2052_p9 = pnand %p2050_p7, %p2335_p8 }
  0xb9   : > { %p2053_p4 = pneg %p2052_p9 }
  0xbb   : > { %p2058_p3 = pnand %p2056_p1, %p2053_p4 }
  0xbd   : > { %2061 = shalt.err (!%p2058_p3)
}
  0xbe   : > { %s2062_s22 = scalar_lea.vmem %s481_s16, 2048  ;;  %p2070_p13 = scmp.lt.s32.totalorder %s481_s16, %s481_s16 }
  0xbf   : > { %p2063_p10 = scmp.ne.s32.totalorder %s481_s16, %s2062_s22  ;;  %p2071_p0 = scmp.lt.s32.totalorder %s2062_s22, %s2062_s22 }
  0xc1   : > { %p2065_p11 = pnand %p2063_p10, %p2335_p8  ;;  %p2072_p2 = por %p2071_p0, %p2070_p13 }
  0xc3   : > { %p2066_p12 = pneg %p2065_p11 }
  0xc5   : > { %p2073_p5 = pnand %p2072_p2, %p2066_p12 }
  0xc7   : > { %2076 = shalt.err (!%p2073_p5)
}
  0xc8   : > { %1809 = dma.hbm_to_vmem [thread:$0]  (!%p2321_p6), %s2819_s11, 2048, %s481_s16, [#allocation15], %s2849_s13, %s2849_s13, %s2848_s12  }
  0xc9   : > { %s1467_s28 = sadd.s32 4294967294, %s2189_s21   ;;  %s2481_s26 = sadd.s32 1, %s2189_s21  }
  0xca   : > { %s42_s27 = sadd.s32 1, %s2185_s20  ;;  %s39_s14 = ssub.s32 %s2189_s21, %s2481_s26 }
  0xcb   : > { %p49_p8 = scmp.ne.s32.totalorder %s2185_s20, %s2181_s19  ;;  %p40_p7 = scmp.eq.s32.totalorder %s39_s14, 0 }
  0xcc   : > { %p50_p9 = scmp.eq.s32.totalorder %s2189_s21, 0  ;;  %p55_p4 = scmp.ne.s32.totalorder %s2181_s19, %s2177_s18 }
  0xcd   : > { %p373_p1 = scmp.eq.s32.totalorder %s2305_s24, 1  ;;  %p2850_p10 = scmp.eq.s32.totalorder %s2305_s24, 0 }
  0xce   : > { %s2493_s1 = scalar_select %p40_p7, %s2185_s20, %s42_s27  }
  0xcf   : > { %p51_p3 = por %p50_p9, %p49_p8  ;;  %p2497_p11 = por %p2850_p10, %p55_p4 }
  0xd0   : > { %p2501_p6 = por %p373_p1, %p49_p8  ;;  %p379_p12 = scmp.eq.s32.totalorder %s1467_s28, 1 }
  0xd1   : > { %p1825_p13 = scmp.lt.s32.totalorder %s2189_s21, 2  ;;  %s503_s17 = sand.u32 1, %s2185_s20  }
  0xd2   : > { %s2852_s16 = scalar_select %p2501_p6, 1, 0 }
  0xd3   : > { %p2507_p0 = por %p379_p12, %p55_p4  ;;  %s1477_s29 = sshll.u32 %s503_s17, 4 }
  0xd4   : > { %s1498_s22 = sshll.u32 %s2189_s21, 8  ;;  %s507_s14 = scalar_lea.vmem [#allocation2], %s1477_s29 }
  0xd5   : > { %s2853_s15 = scalar_select %p2507_p0, 1, 0 }
  0xd6   : > { %s2515_s27 = scalar_lea.hbm %s2808_s0, %s1498_s22  ;;  %s514_s2 = sshll.u32 %s507_s14, 4  ;;  %s2521_s2 = int_to_ptr.vmem [resolvable:$true] %s514_s2 }
  0xd7   : > { %p2517_p2 = pnand %p1825_p13, %p51_p3  ;;  %s2523_s3 = scalar_lea.sflag [#allocation3], %s503_s17 }
  0xd8   : > { %s2077_s4 = scalar_lea.hbm %s2515_s27, 256  ;;  %s2082_s8 = scalar_lea.hbm %s2808_s0, 512 }
  0xd9   : > { %p2078_p5 = scmp.ne.s32.totalorder %s2515_s27, %s2077_s4  ;;  %p2079_p8 = pneg %p2517_p2 }
  0xda   : > { %p2083_p4 = scmp.lt.u32.totalorder %s2515_s27, %s2808_s0  ;;  %p2084_p1 = scmp.lt.u32.totalorder %s2082_s8, %s2077_s4 }
  0xdb   : > { %p2080_p7 = pnand %p2079_p8, %p2078_p5  ;;  %p2086_p10 = scmp.lt.u32.totalorder %s2077_s4, %s2515_s27 }
  0xdc   : > { %p2085_p3 = por %p2084_p1, %p2083_p4 }
  0xdd   : > { %p2081_p9 = pneg %p2080_p7 }
  0xde   : > { %p2087_p12 = por %p2086_p10, %p2085_p3 }
  0xe0   : > { %p2088_p13 = pnand %p2087_p12, %p2081_p9 }
  0xe2   : > { %2091 = shalt.err (!%p2088_p13)
}
  0xe3   : > { %s2092_s17 = scalar_lea.vmem %s2521_s2, 256  ;;  %s2200_s29 = smov [#allocation2]  }
  0xe4   : > { %p2093_p5 = scmp.ne.s32.totalorder %s2521_s2, %s2092_s17  ;;  %s2097_s22 = sshll.u32 %s2200_s29, 4  ;;  %s2098_s22 = int_to_ptr.vmem [resolvable:$false] %s2097_s22 }
  0xe5   : > { %s2099_s23 = scalar_lea.vmem %s2098_s22, 512  ;;  %p2100_p6 = scmp.lt.s32.totalorder %s2521_s2, %s2098_s22 }
  0xe6   : > { %p2095_p7 = pnand %p2093_p5, %p2079_p8  ;;  %p2101_p4 = scmp.lt.s32.totalorder %s2099_s23, %s2092_s17 }
  0xe8   : > { %p2096_p0 = pneg %p2095_p7  ;;  %p2102_p1 = por %p2101_p4, %p2100_p6 }
  0xea   : > { %p2103_p3 = pnand %p2102_p1, %p2096_p0 }
  0xec   : > { %2106 = shalt.err (!%p2103_p3)
}
  0xed   : > { %1813 = dma.hbm_to_vmem [thread:$0]  (!%p2517_p2), %s2515_s27, 256, %s2521_s2, %s2523_s3, %s2849_s13, %s2849_s13, %s2848_s12  }
  0xee   : > { %p2855_p8 = scmp.ne.s32.totalorder %s2841_s25, 0 }
  0xef   : > { %s2557_s4 = sand.u32 (!%p2855_p8), 1, %s2181_s19  }
  0xf0   : > { %526 = sbr.rel (%p2855_p8) target bundleno = 884 (0x374), region = 80  ;;  %s1481_s8 = sshll.u32 (!%p2855_p8), %s2557_s4, 4 }
  0xf1   : > { %s529_s14 = scalar_lea.sflag (!%p2855_p8), [#allocation3], %s2557_s4  ;;  %s2561_s17 = scalar_lea.vmem (!%p2855_p8), [#allocation2], %s1481_s8 }
  0xf7   : > { %2152 = dma.done.wait (%p2497_p11), %s529_s14, 256  }
  0xf8   : > { %2154 = vsyncadd (%p2497_p11), %s529_s14, 4294967040  ;;  %p2856_p6 = scmp.eq.s32.totalorder %s2305_s24, 0 }
  0xfa   : > { %2156 = dma.done.wait (%p2856_p6), [#allocation6], 80   ;;  %p2857_p0 = pmov %p2856_p6 }
  0xfc   : > { %2158 = vsyncadd (%p2857_p0), [#allocation6], 4294967216  ;;  %p2858_p2 = pmov %p2857_p0 }
  0xfd   : > { %p2859_p9 = pmov %p2857_p0 }
  0xfe   : > { %2160 = dma.done.wait (%p2858_p2), [#allocation9], 2064  }
  0xff   : > { %2162 = vsyncadd (%p2859_p9), [#allocation9], 4294965232  ;;  %p2860_p10 = pmov %p2857_p0 }
 0x100   : > { %p2861_p12 = pmov %p2857_p0 }
 0x101   : > { %2164 = dma.done.wait (%p2860_p10), [#allocation12], 2064  }
 0x102   : > { %2166 = vsyncadd (%p2861_p12), [#allocation12], 4294965232  ;;  %p2862_p11 = pmov %p2857_p0 }
 0x103   : > { %p2863_p13 = pmov %p2857_p0 }
 0x104   : > { %2168 = dma.done.wait (%p2862_p11), [#allocation15], 2048  }
 0x105   : > { %2170 = vsyncadd (%p2863_p13), [#allocation15], 4294965248  ;;  %v676_v0 = vld [vmem:[#allocation8] sm:$0xff]  ;;  %v677_v1 = vld [vmem:[#allocation8 + $0x8] sm:$0xff]  ;;  %v621_v3 = vlaneseq  ;;  %vm611_vm0 = vcmask 1040384   ;;  %vm774_vm1 = vcmask 1041408  }
 0x106   : > { %v877_v2 = vld [vmem:[#allocation13] sm:$0xff]  ;;  %v1658_v4 = vpack.c.bf16 %v677_v1, %v676_v0  ;;  %v878_v5 = vld [vmem:[#allocation13 + $0x8] sm:$0xff]  ;;  %v679_v7 = vld [vmem:[#allocation8 + $0x18] sm:$0xff]  ;;  %vm637_vm2 = vcmask 1046528   ;;  %vm657_vm3 = vcmask 1045504   ;;  %vm838_vm4 = vcmask 1044480  }
 0x107   : > { %v678_v6 = vld [vmem:[#allocation8 + $0x10] sm:$0xff]  ;;  %v1690_v8 = vpack.c.bf16 %v878_v5, %v877_v2  ;;  %v880_v11 = vld [vmem:[#allocation13 + $0x18] sm:$0xff]  ;;  %v681_v14 = vld [vmem:[#allocation8 + $0x28] sm:$0xff]  ;;  %v2583_v19 = vshrl.u32 %v621_v3, 7  ;;  %vm975_vm5 = vcmask 1042432   ;;  %vm858_vm6 = vcmask 1043456  }
 0x108   : > { %v1662_v9 = vpack.c.bf16 %v679_v7, %v678_v6  ;;  %v879_v10 = vld [vmem:[#allocation13 + $0x10] sm:$0xff]  ;;  %v680_v12 = vld [vmem:[#allocation8 + $0x20] sm:$0xff]  ;;  %1659 = vmatprep.subr.bf16.mxu0 %v1658_v4  ;;  %v882_v16 = vld [vmem:[#allocation13 + $0x28] sm:$0xff]  ;;  %s2864_s29 = sld [smem:[#allocation27_spill]]  ;;  %s2865_s8 = sld [smem:[#allocation28_spill]] }
 0x109   : > { %v1694_v13 = vpack.c.bf16 %v880_v11, %v879_v10  ;;  %v881_v15 = vld [vmem:[#allocation13 + $0x20] sm:$0xff]  ;;  %1691 = vmatprep.subr.bf16.mxu1 %v1690_v8  ;;  %1661 = vmatpush3.bf16.msra.mxu0 %v1658_v4  ;;  %v682_v17 = vld [vmem:[#allocation8 + $0x30] sm:$0xff]  ;;  %v683_v18 = vld [vmem:[#allocation8 + $0x38] sm:$0xff]  ;;  %v1666_v20 = vpack.c.bf16 %v681_v14, %v680_v12  ;;  %v2586_v35 = vsub.s32 0, %v2583_v19  ;;  %v2589_v36 = vsub.s32 1, %v2583_v19  ;;  %s2866_s2 = sld [smem:[#allocation29_spill]] }
 0x10a   : > { %1693 = vmatpush3.bf16.msra.mxu1 %v1690_v8  ;;  %1663 = vmatprep.subr.bf16.mxu0 %v1662_v9  ;;  %v883_v21 = vld [vmem:[#allocation13 + $0x30] sm:$0xff]  ;;  %v884_v22 = vld [vmem:[#allocation13 + $0x38] sm:$0xff]  ;;  %v685_v24 = vld [vmem:[#allocation8 + $0x48] sm:$0xff]  ;;  %v1698_v25 = vpack.c.bf16 %v882_v16, %v881_v15  ;;  %v1670_v37 = vpack.c.bf16 %v683_v18, %v682_v17  ;;  %v2592_v41 = vsub.s32 2, %v2583_v19  ;;  %v830_v42 = vsub.s32 3, %v2583_v19  ;;  %s2867_s12 = sld [smem:[#allocation30_spill]] }
 0x10b   : > { %v684_v23 = vld [vmem:[#allocation8 + $0x40] sm:$0xff]  ;;  %1695 = vmatprep.subr.bf16.mxu1 %v1694_v13  ;;  %v886_v27 = vld [vmem:[#allocation13 + $0x48] sm:$0xff]  ;;  %v687_v29 = vld [vmem:[#allocation8 + $0x58] sm:$0xff]  ;;  %v850_v43 = vsub.s32 4, %v2583_v19  ;;  %v1702_v44 = vpack.c.bf16 %v884_v22, %v883_v21  ;;  %s1754_s13 = smul.u32 48, %s2557_s4  ;;  %s2868_s23 = sld [smem:[#allocation31_spill]] }
 0x10c   : > { %v885_v26 = vld [vmem:[#allocation13 + $0x40] sm:$0xff]  ;;  %v686_v28 = vld [vmem:[#allocation8 + $0x50] sm:$0xff]  ;;  %v888_v31 = vld [vmem:[#allocation13 + $0x58] sm:$0xff]  ;;  %v1674_v45 = vpack.c.bf16 %v685_v24, %v684_v23  ;;  %s1755_s30 = smul.u32 768, %s2305_s24  ;;  %s1314_s24 = scalar_lea.sflag [#allocation4], %s2557_s4 }
 0x10d   : > { %v887_v30 = vld [vmem:[#allocation13 + $0x50] sm:$0xff]  ;;  %1665 = vmatpush3.bf16.msra.mxu0 %v1662_v9  ;;  %v688_v32 = vld [vmem:[#allocation8 + $0x60] sm:$0xff]  ;;  %v689_v33 = vld [vmem:[#allocation8 + $0x68] sm:$0xff]  ;;  %v1706_v46 = vpack.c.bf16 %v886_v27, %v885_v26  ;;  %v2596_v47 = vpack.c.bf16 %v687_v29, %v686_v28  ;;  %s606_s27 = scalar_lea.vmem [#allocation16], %s1754_s13  ;;  %p2869_p7 = scmp.ne.s32.totalorder %s2852_s16, 0 }
 0x10e   : > { %v889_v34 = vld [vmem:[#allocation13 + $0x60] sm:$0xff]  ;;  %1697 = vmatpush3.bf16.msra.mxu1 %v1694_v13  ;;  %1667 = vmatprep.subr.bf16.mxu0 %v1666_v20  ;;  %v890_v38 = vld [vmem:[#allocation13 + $0x68] sm:$0xff]  ;;  %v691_v40 = vld [vmem:[#allocation8 + $0x78] sm:$0xff]  ;;  %v2601_v51 = vpack.c.bf16 %v888_v31, %v887_v30  ;;  %v2603_v52 = vpack.c.bf16 %v689_v33, %v688_v32  ;;  %s1327_s28 = sshll.u32 %s606_s27, 4  ;;  %s2764_s28 = int_to_ptr.vmem [resolvable:$true] %s1327_s28 }
 0x10f   : > { %v690_v39 = vld [vmem:[#allocation8 + $0x70] sm:$0xff]  ;;  %1699 = vmatprep.subr.bf16.mxu1 %v1698_v25  ;;  %v892_v49 = vld [vmem:[#allocation13 + $0x78] sm:$0xff]  ;;  %v2605_v53 = vpack.c.bf16 %v890_v38, %v889_v34  ;;  %s2107_s14 = scalar_lea.vmem %s2764_s28, 768 }
 0x110   : > { %v891_v48 = vld [vmem:[#allocation13 + $0x70] sm:$0xff]  ;;  %v2615_v61 = vpack.c.bf16 %v691_v40, %v690_v39  ;;  %v1489_v31 = vld [vmem:[#allocation7] ss:$0 sm:$0xff]  ;;  %p2108_p5 = scmp.ne.s32.totalorder %s2764_s28, %s2107_s14 }
 0x111   : > { %v2599_v50 = vld [vmem:[%s2561_s17] sm:$0xff]  ;;  %v2608_v54 = vld [vmem:[%s2561_s17 + $0x8] sm:$0xff]  ;;  %1669 = vmatpush3.bf16.msra.mxu0 %v1666_v20  ;;  %v2617_v62 = vpack.c.bf16 %v892_v49, %v891_v48  ;;  %s2201_s17 = smov [#allocation16]  }
 0x112   : > { %v612_v55 = vrot.slane %v2599_v50, 7  ;;  %v620_v56 = vld [vmem:[#allocation5] sm:$0x7]  ;;  %v613_v57 = vrot.slane %v2608_v54, 7  ;;  %1701 = vmatpush3.bf16.msra.mxu1 %v1698_v25  ;;  %1671 = vmatprep.subr.bf16.mxu0 %v1670_v37  ;;  %v775_v0 = vrot.slane %v2599_v50, 6  ;;  %v776_v12 = vrot.slane %v2608_v54, 6  ;;  %p2109_p4 = pnand %p2108_p5, %p2869_p7 }
 0x113   : > { %v624_v58 = vrot.slane %v620_v56, %v2586_v35  ;;  %v630_v59 = vrot.slane %v620_v56, %v2589_v36  ;;  %v650_v60 = vrot.slane %v620_v56, %v2592_v41  ;;  %1703 = vmatprep.subr.bf16.mxu1 %v1702_v44  ;;  %v783_v13 = vld [vmem:[%s2813_s5] sm:$0x1f] }
 0x114   : > { %v618_v63 = vsel %vm611_vm0, 0.0, %v612_v55  ;;  %v614_v1 = vsel %vm611_vm0, %v612_v55, %v613_v57  ;;  %v619_v2 = vsel %vm611_vm0, %v613_v57, 0.0  ;;  %v2628_v17 = vsel %vm774_vm1, 0.0, %v775_v0  ;;  %p2110_p1 = pneg %p2109_p4 }
 0x115   : > { %v625_v3 = vmul.f32 %v624_v58, %v618_v63  ;;  %v631_v4 = vmul.f32 %v630_v59, %v618_v63  ;;  %v626_v5 = vmul.f32 %v624_v58, %v614_v1  ;;  %v632_v6 = vmul.f32 %v630_v59, %v614_v1  ;;  %1673 = vmatpush3.bf16.msra.mxu0 %v1670_v37 }
 0x116   : > { %v633_v7 = vmul.f32 %v630_v59, %v619_v2  ;;  %v651_v8 = vmul.f32 %v650_v60, %v618_v63  ;;  %v652_v10 = vmul.f32 %v650_v60, %v614_v1  ;;  %v653_v11 = vmul.f32 %v650_v60, %v619_v2  ;;  %1705 = vmatpush3.bf16.msra.mxu1 %v1702_v44 }
 0x117   : > { %v638_v9 = vrot.slane %v631_v4, 1  ;;  %1675 = vmatprep.subr.bf16.mxu0 %v1674_v45  ;;  %v639_v14 = vrot.slane %v632_v6, 1  ;;  %1707 = vmatprep.subr.bf16.mxu1 %v1706_v46  ;;  %v777_v21 = vsel %vm774_vm1, %v775_v0, %v776_v12  ;;  %v2632_v22 = vsel %vm774_vm1, %v776_v12, 0.0 }
 0x118   : > { %v641_v15 = vrot.slane %v633_v7, 1  ;;  %v658_v16 = vrot.slane %v651_v8, 2  ;;  %v659_v18 = vrot.slane %v652_v10, 2  ;;  %v661_v20 = vrot.slane %v653_v11, 2 }
 0x119   : > { %v640_v23 = vsel %vm637_vm2, %v638_v9, %v639_v14  ;;  %v787_v25 = vrot.slane %v783_v13, %v2586_v35  ;;  %v793_v26 = vrot.slane %v783_v13, %v2589_v36  ;;  %1677 = vmatpush3.bf16.msra.mxu0 %v1674_v45  ;;  %v812_v45 = vrot.slane %v783_v13, %v2592_v41 }
 0x11a   : > { %v642_v24 = vsel %vm637_vm2, %v639_v14, %v641_v15  ;;  %v645_v27 = vadd.f32 %v640_v23, %v625_v3  ;;  %v660_v29 = vsel %vm657_vm3, %v658_v16, %v659_v18  ;;  %v662_v30 = vsel %vm657_vm3, %v659_v18, %v661_v20  ;;  %1709 = vmatpush3.bf16.msra.mxu1 %v1706_v46  ;;  %v1115_v23 = vld [vmem:[#allocation14 + $0x8] sm:$0xff] }
 0x11b   : > { %v646_v28 = vadd.f32 %v642_v24, %v626_v5  ;;  %1679 = vmatprep.subr.bf16.mxu0 %v2596_v47  ;;  %v788_v32 = vmul.f32 %v787_v25, %v2628_v17  ;;  %v789_v33 = vmul.f32 %v787_v25, %v777_v21  ;;  %v794_v34 = vmul.f32 %v793_v26, %v2628_v17 }
 0x11c   : > { %1711 = vmatprep.subr.bf16.mxu1 %v2601_v51  ;;  %v665_v37 = vadd.f32 %v660_v29, %v645_v27  ;;  %v795_v39 = vmul.f32 %v793_v26, %v777_v21  ;;  %v796_v40 = vmul.f32 %v793_v26, %v2632_v22  ;;  %v831_v46 = vrot.slane %v783_v13, %v830_v42  ;;  %v1116_v27 = vld [vmem:[#allocation14 + $0x10] sm:$0xff] }
 0x11d   : > { %v666_v38 = vadd.f32 %v662_v30, %v646_v28  ;;  %v800_v44 = vrot.slane %v794_v34, 1  ;;  %v851_v48 = vrot.slane %v783_v13, %v850_v43  ;;  %1681 = vmatpush3.bf16.msra.mxu0 %v2596_v47  ;;  %v977_v58 = vrot.slane %v2608_v54, 5  ;;  %v1117_v28 = vld [vmem:[#allocation14 + $0x18] sm:$0xff] }
 0x11e   : > { %v674_v49 = vadd.f32 %v1489_v31, %v665_v37  ;;  %v801_v56 = vrot.slane %v795_v39, 1  ;;  %v803_v57 = vrot.slane %v796_v40, 1  ;;  %1713 = vmatpush3.bf16.msra.mxu1 %v2601_v51  ;;  %1683 = vmatprep.subr.bf16.mxu0 %v2603_v52  ;;  %v813_v59 = vmul.f32 %v812_v45, %v2628_v17  ;;  %v1118_v40 = vld [vmem:[#allocation14 + $0x20] sm:$0xff] }
 0x11f   : > { %v675_v55 = vadd.f32 %v1489_v31, %v666_v38  ;;  %v814_v60 = vmul.f32 %v812_v45, %v777_v21  ;;  %v815_v63 = vmul.f32 %v812_v45, %v2632_v22  ;;  %1715 = vmatprep.subr.bf16.mxu1 %v2605_v53  ;;  %v976_v47 = vrot.slane %v2599_v50, 5  ;;  %v1120_v45 = vld [vmem:[#allocation14 + $0x30] sm:$0xff] }
 0x120   : > { %1585 = vmatprep.mubr.f32.mxu0 %v674_v49  ;;  %v802_v0 = vsel %vm637_vm2, %v800_v44, %v801_v56  ;;  %v804_v1 = vsel %vm637_vm2, %v801_v56, %v803_v57  ;;  %v832_v51 = vmul.f32 %v831_v46, %v2628_v17  ;;  %v819_v4 = vrot.slane %v813_v59, 2  ;;  %v1119_v44 = vld [vmem:[#allocation14 + $0x28] sm:$0xff]  ;;  %v1121_v57 = vld [vmem:[#allocation14 + $0x38] sm:$0xff] }
 0x121   : > { %v807_v2 = vadd.f32 %v802_v0, %v788_v32  ;;  %v808_v3 = vadd.f32 %v804_v1, %v789_v33  ;;  %v820_v54 = vrot.slane %v814_v60, 2  ;;  %1685 = vmatpush3.bf16.msra.mxu0 %v2603_v52  ;;  %v822_v5 = vrot.slane %v815_v63, 2  ;;  %v1491_v32 = vld [vmem:[#allocation11] ss:$0 sm:$0xff]  ;;  %v1123_v59 = vld [vmem:[#allocation14 + $0x48] sm:$0xff] }
 0x122   : > { %v833_v6 = vmul.f32 %v831_v46, %v777_v21  ;;  %v834_v7 = vmul.f32 %v831_v46, %v2632_v22  ;;  %v839_v8 = vrot.slane %v832_v51, 3  ;;  %1717 = vmatpush3.bf16.msra.mxu1 %v2605_v53  ;;  %1687 = vmatprep.subr.bf16.mxu0 %v2615_v61  ;;  %v852_v10 = vmul.f32 %v851_v48, %v2628_v17  ;;  %v2676_v17 = vld [vmem:[%s2817_s9] sm:$0x7f] }
 0x123   : > { %v821_v9 = vsel %vm657_vm3, %v819_v4, %v820_v54  ;;  %v853_v11 = vmul.f32 %v851_v48, %v777_v21  ;;  %v2668_v12 = vsel %vm975_vm5, %v977_v58, 0.0  ;;  %1719 = vmatprep.subr.bf16.mxu1 %v2617_v62  ;;  %v823_v52 = vsel %vm657_vm3, %v820_v54, %v822_v5  ;;  %v1114_v21 = vld [vmem:[#allocation14] sm:$0xff] }
 0x124   : > { %v826_v13 = vadd.f32 %v821_v9, %v807_v2  ;;  %v840_v14 = vrot.slane %v833_v6, 3  ;;  %v842_v15 = vrot.slane %v834_v7, 3  ;;  %v827_v16 = vadd.f32 %v823_v52, %v808_v3 }
 0x125   : > { %v854_v53 = vmul.f32 %v851_v48, %v2632_v22  ;;  %v859_v18 = vrot.slane %v852_v10, 4  ;;  %v860_v20 = vrot.slane %v853_v11, 4  ;;  %1689 = vmatpush3.bf16.msra.mxu0 %v2615_v61  ;;  %v2684_v26 = vsel %vm975_vm5, %v976_v47, %v977_v58  ;;  %v1122_v58 = vld [vmem:[#allocation14 + $0x40] sm:$0xff] }
 0x126   : > { %v841_v24 = vsel %vm838_vm4, %v839_v8, %v840_v14  ;;  %v843_v25 = vsel %vm838_vm4, %v840_v14, %v842_v15  ;;  %v1032_v22 = vrot.slane %v2676_v17, %v830_v42  ;;  %1721 = vmatpush3.bf16.msra.mxu1 %v2617_v62  ;;  %v1051_v37 = vrot.slane %v2676_v17, %v850_v43 }
 0x127   : > { %v846_v29 = vadd.f32 %v841_v24, %v826_v13  ;;  %v847_v30 = vadd.f32 %v843_v25, %v827_v16  ;;  %v861_v61 = vsel %vm858_vm6, %v859_v18, %v860_v20  ;;  %v862_v31 = vrot.slane %v854_v53, 4 }
 0x128   : > { %v1034_v33 = vmul.f32 %v1032_v22, %v2684_v26  ;;  %v1035_v34 = vmul.f32 %v1032_v22, %v2668_v12  ;;  %v1722_v38 = vpack.c.bf16 %v1115_v23, %v1114_v21  ;;  %1586 = vmatmul.mubr.f32.vlgmr.msra.gmra.mrb[0].mxu0 %v675_v55  ;;  %v1726_v62 = vpack.c.bf16 %v1117_v28, %v1116_v27  ;;  %v1124_v28 = vld [vmem:[#allocation14 + $0x50] sm:$0xff] }
 0x129   : > { %v863_v42 = vsel %vm858_vm6, %v860_v20, %v862_v31  ;;  %v866_v39 = vadd.f32 %v861_v61, %v846_v29  ;;  %v2698_v56 = vmul.f32 %v1051_v37, %v2684_v26  ;;  %v1054_v60 = vmul.f32 %v1051_v37, %v2668_v12  ;;  %v1125_v29 = vld [vmem:[#allocation14 + $0x58] sm:$0xff] }
 0x12a   : > { %v867_v46 = vadd.f32 %v863_v42, %v847_v30  ;;  %v1040_v48 = vrot.slane %v1034_v33, 3  ;;  %v1042_v49 = vrot.slane %v1035_v34, 3  ;;  %1723 = vmatprep.subr.bf16.mxu0 %v1722_v38  ;;  %v1069_v55 = vsub.s32 5, %v2583_v19 }
 0x12b   : > { %v875_v43 = vadd.f32 %v1491_v32, %v866_v39  ;;  %1725 = vmatpush3.bf16.msra.mxu0 %v1722_v38  ;;  %v1730_v0 = vpack.c.bf16 %v1119_v44, %v1118_v40  ;;  %v982_v1 = vsel %vm975_vm5, 0.0, %v976_v47  ;;  %v1088_v51 = vsub.s32 6, %v2583_v19 }
 0x12c   : > { %v876_v63 = vadd.f32 %v1491_v32, %v867_v46  ;;  %1727 = vmatprep.subr.bf16.mxu0 %v1726_v62  ;;  %v1043_v2 = vsel %vm838_vm4, %v1040_v48, %v1042_v49  ;;  %v1734_v3 = vpack.c.bf16 %v1121_v57, %v1120_v45  ;;  %v1738_v4 = vpack.c.bf16 %v1123_v59, %v1122_v58  ;;  %v1126_v59 = vld [vmem:[#allocation14 + $0x60] sm:$0xff] }
 0x12d   : > { %1620 = vmatprep.mubr.f32.mxu1 %v875_v43  ;;  %v988_v54 = vrot.slane %v2676_v17, %v2586_v35  ;;  %v1059_v5 = vrot.slane %v2698_v56, 4  ;;  %v994_v6 = vrot.slane %v2676_v17, %v2589_v36  ;;  %v1013_v50 = vrot.slane %v2676_v17, %v2592_v41  ;;  %v1127_v43 = vld [vmem:[#allocation14 + $0x68] sm:$0xff] }
 0x12e   : > { %1621 = vmatmul.mubr.f32.vlgmr.msra.gmra.mrb[0].mxu1 %v876_v63  ;;  %v1033_v47 = vmul.f32 %v1032_v22, %v982_v1  ;;  %v1061_v7 = vrot.slane %v1054_v60, 4  ;;  %v1052_v8 = vmul.f32 %v1051_v37, %v982_v1  ;;  %v1070_v9 = vrot.slane %v2676_v17, %v1069_v55 }
 0x12f   : > { %1729 = vmatpush3.bf16.msra.mxu0 %v1726_v62  ;;  %v989_v19 = vmul.f32 %v988_v54, %v982_v1  ;;  %v995_v10 = vmul.f32 %v994_v6, %v982_v1  ;;  %v996_v11 = vmul.f32 %v994_v6, %v2684_v26  ;;  %v997_v52 = vmul.f32 %v994_v6, %v2668_v12 }
 0x130   : > { %1731 = vmatprep.subr.bf16.mxu0 %v1730_v0  ;;  %v1014_v13 = vmul.f32 %v1013_v50, %v982_v1  ;;  %v990_v14 = vmul.f32 %v988_v54, %v2684_v26  ;;  %v1015_v15 = vmul.f32 %v1013_v50, %v2684_v26  ;;  %v1016_v16 = vmul.f32 %v1013_v50, %v2668_v12  ;;  %v1128_v50 = vld [vmem:[#allocation14 + $0x70] sm:$0xff] }
 0x131   : > { %v1039_v53 = vrot.slane %v1033_v47, 3  ;;  %v1001_v18 = vrot.slane %v995_v10, 1  ;;  %v1002_v20 = vrot.slane %v996_v11, 1  ;;  %v1004_v21 = vrot.slane %v997_v52, 1  ;;  %v1129_v47 = vld [vmem:[#allocation14 + $0x78] sm:$0xff] }
 0x132   : > { %v1020_v23 = vrot.slane %v1014_v13, 2  ;;  %v1021_v24 = vrot.slane %v1015_v15, 2  ;;  %v1023_v25 = vrot.slane %v1016_v16, 2  ;;  %v1058_v27 = vrot.slane %v1052_v8, 4  ;;  %v1490_v16 = vld [vmem:[#allocation10] ss:$0 sm:$0xff] }
 0x133   : > { %1733 = vmatpush3.bf16.msra.mxu0 %v1730_v0  ;;  %v1041_v22 = vsel %vm838_vm4, %v1039_v53, %v1040_v48  ;;  %v1003_v30 = vsel %vm637_vm2, %v1001_v18, %v1002_v20  ;;  %v1005_v61 = vsel %vm637_vm2, %v1002_v20, %v1004_v21  ;;  %v1071_v31 = vmul.f32 %v1070_v9, %v982_v1  ;;  %v1492_v53 = vld [vmem:[%s2864_s29] ss:$0 sm:$0xff] }
 0x134   : > { %1735 = vmatprep.subr.bf16.mxu0 %v1734_v3  ;;  %v1072_v32 = vmul.f32 %v1070_v9, %v2684_v26  ;;  %v1008_v33 = vadd.f32 %v1003_v30, %v989_v19  ;;  %v1009_v34 = vadd.f32 %v1005_v61, %v990_v14  ;;  %v1022_v37 = vsel %vm657_vm3, %v1020_v23, %v1021_v24  ;;  %v1494_v21 = vld [vmem:[%s2865_s8] ss:$0 sm:$0xff]  ;;  %s2762_s8 = scalar_lea.hbm %s2868_s23, %s1755_s30 }
 0x135   : > { %v1024_v38 = vsel %vm657_vm3, %v1021_v24, %v1023_v25  ;;  %v1073_v42 = vmul.f32 %v1070_v9, %v2668_v12  ;;  %v1077_v39 = vrot.slane %v1071_v31, 5  ;;  %v1089_v40 = vrot.slane %v2676_v17, %v1088_v51 }
 0x136   : > { %v1078_v62 = vrot.slane %v1072_v32, 5  ;;  %v1062_v44 = vsel %vm858_vm6, %v1059_v5, %v1061_v7  ;;  %v1742_v45 = vpack.c.bf16 %v1125_v29, %v1124_v28  ;;  %v1027_v46 = vadd.f32 %v1022_v37, %v1008_v33 }
 0x137   : > { %1737 = vmatpush3.bf16.msra.mxu0 %v1734_v3  ;;  %v1028_v48 = vadd.f32 %v1024_v38, %v1009_v34  ;;  %v1060_v49 = vsel %vm858_vm6, %v1058_v27, %v1059_v5  ;;  %v1080_v56 = vrot.slane %v1073_v42, 5  ;;  %v1090_v57 = vmul.f32 %v1089_v40, %v982_v1 }
 0x138   : > { %1739 = vmatprep.subr.bf16.mxu0 %v1738_v4  ;;  %v1091_v58 = vmul.f32 %v1089_v40, %v2684_v26  ;;  %v1046_v60 = vadd.f32 %v1041_v22, %v1027_v46  ;;  %v1092_v63 = vmul.f32 %v1089_v40, %v2668_v12  ;;  %v1079_v17 = vsel %vm975_vm5, %v1077_v39, %v1078_v62  ;;  %v1493_v12 = vld [vmem:[%s2818_s10] ss:$0 sm:$0xff] }
 0x139   : > { %v1047_v55 = vadd.f32 %v1043_v2, %v1028_v48  ;;  %v1096_v0 = vrot.slane %v1090_v57, 6  ;;  %v1081_v6 = vsel %vm975_vm5, %v1078_v62, %v1080_v56  ;;  %v1746_v1 = vpack.c.bf16 %v1127_v43, %v1126_v59 }
 0x13a   : > { %v1097_v51 = vrot.slane %v1091_v58, 6  ;;  %v1065_v3 = vadd.f32 %v1060_v49, %v1046_v60  ;;  %v1099_v5 = vrot.slane %v1092_v63, 6  ;;  %v1750_v8 = vpack.c.bf16 %v1129_v47, %v1128_v50 }
 0x13b   : > { %1741 = vmatpush3.bf16.msra.mxu0 %v1738_v4  ;;  %v1066_v54 = vadd.f32 %v1062_v44, %v1047_v55 }
 0x13c   : > { %1743 = vmatprep.subr.bf16.mxu0 %v1742_v45  ;;  %v1098_v26 = vsel %vm774_vm1, %v1096_v0, %v1097_v51  ;;  %v1084_v7 = vadd.f32 %v1079_v17, %v1065_v3  ;;  %v1100_v4 = vsel %vm774_vm1, %v1097_v51, %v1099_v5 }
 0x13d   : > { %v1085_v2 = vadd.f32 %v1081_v6, %v1066_v54  ;;  %v1255_v54 = vld [vmem:[%s2866_s2] sm:$0x7]  ;;  %s2111_s2 = sshll.u32 %s2201_s17, 4  ;;  %s2112_s2 = int_to_ptr.vmem [resolvable:$false] %s2111_s2 }
 0x13e   : > { %v1103_v19 = vadd.f32 %v1098_v26, %v1084_v7  ;;  %v1278_v6 = vld [vmem:[%s2867_s12] sm:$0x7]  ;;  %v1260_v5 = vrot.slane %v1255_v54, %v2586_v35  ;;  %v1268_v26 = vrot.slane %v1255_v54, %v2592_v41  ;;  %s2113_s3 = scalar_lea.vmem %s2112_s2, 1536  ;;  %p2114_p3 = scmp.lt.s32.totalorder %s2764_s28, %s2112_s2 }
 0x13f   : > { %1745 = vmatpush3.bf16.msra.mxu0 %v1742_v45  ;;  %v1104_v10 = vadd.f32 %v1100_v4, %v1085_v2  ;;  %v1283_v47 = vrot.slane %v1278_v6, %v2586_v35  ;;  %v1287_v7 = vrot.slane %v1278_v6, %v2589_v36  ;;  %v1291_v2 = vrot.slane %v1278_v6, %v2592_v41  ;;  %p2115_p8 = scmp.lt.s32.totalorder %s2113_s3, %s2107_s14 }
 0x140   : > { %1747 = vmatprep.subr.bf16.mxu0 %v1746_v1  ;;  %v1112_v9 = vadd.f32 %v1493_v12, %v1103_v19 }
 0x141   : > { %v1113_v11 = vadd.f32 %v1493_v12, %v1104_v10  ;;  %p2116_p6 = por %p2115_p8, %p2114_p3 }
 0x142   : > { %1655 = vmatprep.mubr.f32.mxu0 %v1112_v9 }
 0x143   : > { %1749 = vmatpush3.bf16.msra.mxu0 %v1746_v1  ;;  %v1264_v1 = vrot.slane %v1255_v54, %v2589_v36  ;;  %p2117_p0 = pnand %p2116_p6, %p2110_p1 }
 0x144   : > { %1751 = vmatprep.subr.bf16.mxu0 %v1750_v8 }
 0x147   : > { %1753 = vmatpush3.bf16.msra.mxu0 %v1750_v8 }
 0x14a   : > { %1656 = vmatmul.mubr.f32.vlgmr.msra.gmra.mrb[2].mxu0 %v1113_v11 }
 0x1fb   : > { %v1587_v52 = vpop.f32.mrb[0].mxu0 }
 0x1fc   : > { %v765_v13 = vpop.f32.mrb[1].mxu0  ;;  %v771_v25 = vadd.f32 %v1587_v52, %v1490_v16 }
 0x1fd   : > { %v766_v18 = vadd.f32 %v1490_v16, %v765_v13 }
 0x201   : > { %v1622_v14 = vpop.f32.mrb[0].mxu1 }
 0x202   : > { %v966_v15 = vpop.f32.mrb[1].mxu1  ;;  %v972_v22 = vadd.f32 %v1622_v14, %v1492_v53 }
 0x203   : > { %v967_v20 = vadd.f32 %v1492_v53, %v966_v15 }
 0x204   : > { %v1216_v61 = vadd.f32 %v972_v22, %v771_v25 }
 0x205   : > { %v1212_v28 = vadd.f32 %v967_v20, %v766_v18 }
 0x21d   : > { %v1657_v23 = vpop.f32.mrb[2].mxu0 }
 0x21e   : > { %v1203_v24 = vpop.f32.mrb[3].mxu0  ;;  %v1209_v29 = vadd.f32 %v1657_v23, %v1494_v21 }
 0x21f   : > { %v1204_v27 = vadd.f32 %v1494_v21, %v1203_v24 }
 0x220   : > { %v1217_v31 = vadd.f32 %v1216_v61, %v1209_v29 }
 0x221   : > { %v1213_v30 = vadd.f32 %v1212_v28, %v1204_v27 }
 0x223   : > { %1214 = vadd.xlane.f32.xlu0 %v1213_v30 }
 0x227   : > { %1218 = vadd.xlane.f32.xlu0 %v1217_v31 }
 0x2b0   : > { %v1215_v32 = vpop.xlane.xlu0 %1214 }
 0x2b1   : > { %v1221_v33 = vmul.f32 0.0026041667, %v1215_v32 }
 0x2b3   : > { %v1223_v34 = vsub.f32 %v766_v18, %v1221_v33  ;;  %v1224_v37 = vsub.f32 %v967_v20, %v1221_v33  ;;  %v1225_v38 = vsub.f32 %v1204_v27, %v1221_v33 }
 0x2b4   : > { %v1219_v42 = vpop.xlane.xlu0 %1218 }
 0x2b5   : > { %v1222_v39 = vmul.f32 0.0026041667, %v1219_v42  ;;  %v1229_v62 = vmul.f32 %v1223_v34, %v1223_v34  ;;  %v1230_v40 = vmul.f32 %v1224_v37, %v1224_v37  ;;  %v1231_v44 = vmul.f32 %v1225_v38, %v1225_v38 }
 0x2b7   : > { %v1226_v45 = vsub.f32 %v771_v25, %v1222_v39  ;;  %v1227_v46 = vsub.f32 %v972_v22, %v1222_v39  ;;  %v1228_v48 = vsub.f32 %v1209_v29, %v1222_v39  ;;  %v1235_v49 = vadd.f32 %v1230_v40, %v1229_v62 }
 0x2b9   : > { %v1236_v56 = vadd.f32 %v1235_v49, %v1231_v44  ;;  %v1232_v57 = vmul.f32 %v1226_v45, %v1226_v45  ;;  %v1233_v58 = vmul.f32 %v1227_v46, %v1227_v46  ;;  %v1234_v59 = vmul.f32 %v1228_v48, %v1228_v48 }
 0x2bb   : > { %1237 = vadd.xlane.f32.xlu1 %v1236_v56  ;;  %v1239_v43 = vadd.f32 %v1233_v58, %v1232_v57 }
 0x2bd   : > { %v1240_v60 = vadd.f32 %v1239_v43, %v1234_v59 }
 0x2bf   : > { %1241 = vadd.xlane.f32.xlu1 %v1240_v60 }
 0x348   : > { %v1238_v55 = vpop.xlane.xlu1 %1237 }
 0x349   : > { %v1243_v63 = vmul.f32 0.0026041667, %v1238_v55 }
 0x34b   : > { %v1245_v17 = vadd.f32 1e-05, %v1243_v63 }
 0x34c   : > { %v1242_v0 = vpop.xlane.xlu1 %1241 }
 0x34d   : > { %1877 = vrsqrt.f32 %v1245_v17  ;;  %v1244_v51 = vmul.f32 0.0026041667, %v1242_v0 }
 0x34f   : > { %v1246_v3 = vadd.f32 1e-05, %v1244_v51 }
 0x351   : > { %1879 = vrsqrt.f32 %v1246_v3 }
 0x357   : > { %v1878_v50 = vpop.eup %1877 }
 0x358   : > { %v1249_v12 = vmul.f32 %v1878_v50, %v1223_v34  ;;  %v1250_v4 = vmul.f32 %v1878_v50, %v1224_v37  ;;  %v1251_v19 = vmul.f32 %v1878_v50, %v1225_v38 }
 0x35a   : > { %v1272_v8 = vmul.f32 %v1260_v5, %v1249_v12  ;;  %v1273_v9 = vmul.f32 %v1264_v1, %v1250_v4  ;;  %v1274_v10 = vmul.f32 %v1268_v26, %v1251_v19 }
 0x35b   : > { %v1880_v11 = vpop.eup %1879 }
 0x35c   : > { %v1295_v52 = vadd.f32 %v1283_v47, %v1272_v8  ;;  %v1296_v13 = vadd.f32 %v1287_v7, %v1273_v9  ;;  %v1297_v14 = vadd.f32 %v1291_v2, %v1274_v10  ;;  %v1252_v15 = vmul.f32 %v1880_v11, %v1226_v45 }
 0x35d   : > { %v1253_v16 = vmul.f32 %v1880_v11, %v1227_v46  ;;  %v1254_v53 = vmul.f32 %v1880_v11, %v1228_v48 }
 0x35e   : > { %v1301_v35 = vmax.f32 %v1295_v52, 0.0  ;;  %v1302_v18 = vmax.f32 %v1296_v13, 0.0  ;;  %v1303_v36 = vmax.f32 %v1297_v14, 0.0  ;;  %v1275_v20 = vmul.f32 %v1260_v5, %v1252_v15 }
 0x35f   : > { %v1276_v41 = vmul.f32 %v1264_v1, %v1253_v16  ;;  %v1277_v21 = vmul.f32 %v1268_v26, %v1254_v53 }
 0x360   : > { %1307 = vst [vmem:[%s606_s27] sm:$0xff] %v1301_v35  ;;  %1308 = vst [vmem:[%s606_s27 + $0x8] sm:$0xff] %v1302_v18  ;;  %v1298_v23 = vadd.f32 %v1283_v47, %v1275_v20 }
 0x361   : > { %1309 = vst [vmem:[%s606_s27 + $0x10] sm:$0xff] %v1303_v36  ;;  %v1299_v24 = vadd.f32 %v1287_v7, %v1276_v41  ;;  %v1300_v25 = vadd.f32 %v1291_v2, %v1277_v21 }
 0x362   : > { %v1304_v22 = vmax.f32 %v1298_v23, 0.0 }
 0x363   : > { %v1305_v27 = vmax.f32 %v1299_v24, 0.0  ;;  %v1306_v28 = vmax.f32 %v1300_v25, 0.0 }
 0x364   : > { %1310 = vst [vmem:[%s606_s27 + $0x18] sm:$0xff] %v1304_v22 }
 0x365   : > { %1311 = vst [vmem:[%s606_s27 + $0x20] sm:$0xff] %v1305_v27  ;;  %1312 = vst [vmem:[%s606_s27 + $0x28] sm:$0xff] %v1306_v28 }
 0x366   : > { %2120 = shalt.err (!%p2117_p0)
}
 0x367   : > { %s2121_s25 = scalar_lea.hbm %s2762_s8, 768  ;;  %s2125_s30 = scalar_lea.hbm %s2868_s23, 1536 }
 0x368   : > { %p2122_p2 = scmp.ne.s32.totalorder %s2762_s8, %s2121_s25  ;;  %p2126_p12 = scmp.lt.u32.totalorder %s2762_s8, %s2868_s23 }
 0x369   : > { %p2127_p11 = scmp.lt.u32.totalorder %s2125_s30, %s2121_s25  ;;  %p2129_p5 = scmp.lt.u32.totalorder %s2121_s25, %s2762_s8 }
 0x36a   : > { %p2123_p9 = pnand %p2122_p2, %p2869_p7 }
 0x36b   : > { %p2128_p13 = por %p2127_p11, %p2126_p12 }
 0x36c   : > { %p2124_p10 = pneg %p2123_p9 }
 0x36d   : > { %p2130_p4 = por %p2129_p5, %p2128_p13 }
 0x36f   : > { %p2131_p1 = pnand %p2130_p4, %p2124_p10 }
 0x371   : > { %2134 = shalt.err (!%p2131_p1)
}
 0x372   : > { %s2202_s22 = smov 384   ;;  %s2203_s14 = smov 24  }
 0x373   : > { %1786 = dma.vmem_to_hbm [thread:$0]  (%p2869_p7), %s2764_s28, 768, %s2762_s8, %s1314_s24, %s2202_s22, %s2202_s22, %s2203_s14  }
 0x374 PF: > { %s1342_s17 = sand.u32 1, %s2177_s18   ;;  %p2870_p3 = scmp.ne.s32.totalorder %s2853_s15, 0 }
 0x375   : > { %p2871_p8 = scmp.ge.s32.totalorder %s2189_s21, 2  ;;  %s1343_s2 = scalar_lea.sflag [#allocation4], %s1342_s17 }
 0x377   : > { %p1815_p6 = pnand %p2871_p8, %p2870_p3 }
 0x379   : > { %2172 = dma.done.wait (!%p1815_p6), %s1343_s2, 768  }
 0x37a   : > { %2174 = vsyncadd (!%p1815_p6), %s1343_s2, 4294966528  ;;  %p32_p0 = scmp.ge.s32.totalorder %s2481_s26, 4   ;;  %s2872_s18 = smov %s2181_s19 }
 0x37b   : > { %s2873_s19 = smov %s2185_s20  ;;  %s2874_s20 = smov %s2493_s1 }
 0x37c   : > { %s2875_s21 = smov %s2481_s26  ;;  %34 = sbr.rel (!%p32_p0) target bundleno = 19 (0x13), region = 153 }
 0x383   :  { %1348 = vsyncpa [#allocation3], 1 }
 0x384   :  { %1350 = vsyncpa [#allocation3 + $0x1], 1 }
 0x385   :  { %1351 = vsyncpa [#allocation6], 1 }
 0x386   :  { %1352 = vsyncpa [#allocation9], 1 }
 0x387   :  { %1353 = vsyncpa [#allocation12], 1 }
 0x388   :  { %1354 = vsyncpa [#allocation15], 1 }
 0x389   :  { %1355 = vsyncpa [#allocation4], 1 }
 0x38a   :  { %1357 = vsyncpa [#allocation4 + $0x1], 1 }

</bundles_post_ra>
